<compile_context>
chip_gen: v7x
topology: tpu7x:2x2x1
jax: 0.10.0
libtpu: 0.0.40
codegen_flags: <defaults>
</compile_context>

<pallas_src>
import math
import jax
import jax.numpy as jnp
from jax.experimental import pallas as pl
from jax.experimental.pallas import tpu as pltpu


IN_CH = 1024
H0, H1, H2 = 512, 256, 128
OUT_CH = 6
OUT_PAD = 128                      # last layer padded to a full 128-lane vreg
PACKED_W_COLS = H1 + H2            # [w1 | (w2 over w3)] along lanes = 384
PACKED_B_COLS = H0 + H1 + H2 + OUT_PAD  # = 1024


# ----------------------------- Pallas kernel ------------------------------ #

def dn_mlp_kernel(x_ref, w0_ref, wpk_ref, bpk_ref, o_ref):
    """Fused DN MLP: 4 MXU matmuls (bf16 inputs, f32 accumulate) + bias + ReLU."""
    # x arrives as f32; cast to bf16 here (VPU work hidden under the MXU),
    # so the wrapper never does a separate cast pass over the activations.
    x = x_ref[...].astype(jnp.bfloat16)                       # (tb, 1024)

    # layer 0: 1024 -> 512
    h = jnp.dot(x, w0_ref[...], preferred_element_type=jnp.float32)
    h = jnp.maximum(h + bpk_ref[:, 0:H0], 0.0).astype(jnp.bfloat16)

    # layer 1: 512 -> 256   (w1 = packed[:, 0:256])
    h = jnp.dot(h, wpk_ref[:, 0:H1], preferred_element_type=jnp.float32)
    h = jnp.maximum(h + bpk_ref[:, H0:H0 + H1], 0.0).astype(jnp.bfloat16)

    # layer 2: 256 -> 128   (w2 = packed[0:256, 256:384])
    h = jnp.dot(h, wpk_ref[0:H1, H1:H1 + H2], preferred_element_type=jnp.float32)
    h = jnp.maximum(h + bpk_ref[:, H0 + H1:H0 + H1 + H2], 0.0).astype(jnp.bfloat16)

    # layer 3: 128 -> 128 (6 real outputs + zero lane padding), final ReLU
    #          (w3 = packed[256:384, 256:384])
    h = jnp.dot(h, wpk_ref[H1:H1 + H2, H1:H1 + H2],
                preferred_element_type=jnp.float32)
    h = jnp.maximum(h + bpk_ref[:, H0 + H1 + H2:PACKED_B_COLS], 0.0)

    o_ref[...] = h.astype(o_ref.dtype)                        # bf16, lane-dense


# ------------------------------- wrappers ---------------------------------- #

def _round_up(a, m):
    return ((a + m - 1) // m) * m


def prepare_dn_operands(params):
    """One-time packing of DN parameters into the kernel's operand layout.

    Returns dict with:
      w0  : (1024, 512)  bfloat16
      wpk : (512, 384)   bfloat16  -- cols 0:256 = w1,
                                      rows 0:256 / cols 256:384 = w2,
                                      rows 256:384 / cols 256:262 = w3 (rest 0)
      bpk : (1, 1024)    float32   -- [b0 | b1 | b2 | b3(lane pad)]
    """
    w0 = params["w0"].astype(jnp.bfloat16)

    wpk = jnp.zeros((H0, PACKED_W_COLS), dtype=jnp.bfloat16)
    wpk = wpk.at[:, 0:H1].set(params["w1"].astype(jnp.bfloat16))
    wpk = wpk.at[0:H1, H1:H1 + H2].set(params["w2"].astype(jnp.bfloat16))
    wpk = wpk.at[H1:H1 + H2, H1:H1 + OUT_CH].set(params["w3"].astype(jnp.bfloat16))

    b3p = jnp.zeros((1, OUT_PAD), dtype=jnp.float32)
    b3p = b3p.at[:, 0:OUT_CH].set(params["b3"].astype(jnp.float32))
    bpk = jnp.concatenate(
        [params["b0"].astype(jnp.float32),
         params["b1"].astype(jnp.float32),
         params["b2"].astype(jnp.float32),
         b3p], axis=1)                                        # (1, 1024)

    return {"w0": w0, "wpk": wpk, "bpk": bpk}


def _choose_tiling(B, block_b, min_split):
    """Pick (tb, ngrid).  For B > min_split force >= 2 blocks so v7x's two
    TensorCores both get work; boundary block may be ragged (Pallas clips)."""
    if B <= min_split:
        return B, 1                        # single block == full array dims
    ngrid = max(2, pl.cdiv(B, block_b))
    tb = _round_up(pl.cdiv(B, ngrid), 8)   # sublane-aligned tile, no jnp.pad
    ngrid = pl.cdiv(B, tb)
    return tb, ngrid


def dn_forward(x, packed, *, block_b=512, min_split=32):
    """Fused DN MLP forward.  x: (B, 1024) features from the backbone (f32)."""
    B, in_ch = x.shape
    assert in_ch == IN_CH
    x = x.astype(jnp.float32)              # kernel consumes f32 directly

    tb, ngrid = _choose_tiling(B, block_b, min_split)

    flops = 2 * B * (IN_CH * H0 + H0 * H1 + H1 * H2 + H2 * OUT_PAD)
    bytes_accessed = (B * IN_CH * 4 + B * OUT_PAD * 2          # x in, out
                      + IN_CH * H0 * 2 + H0 * PACKED_W_COLS * 2  # bf16 weights
                      + PACKED_B_COLS * 4)                       # f32 biases

    # VMEM is tiny at the default tile; only bump the limit for huge tiles
    # (relevant on v5e's 16 MiB scoped default).
    vmem_limit = (48 * 1024 * 1024) if tb >= 1024 else None

    out = pl.pallas_call(
        dn_mlp_kernel,
        out_shape=jax.ShapeDtypeStruct((B, OUT_PAD), jnp.bfloat16),
        grid_spec=pltpu.PrefetchScalarGridSpec(
            num_scalar_prefetch=0,
            grid=(ngrid,),
            in_specs=[
                pl.BlockSpec((tb, IN_CH), lambda i: (i, 0)),           # x tile
                pl.BlockSpec((IN_CH, H0), lambda i: (0, 0)),           # w0
                pl.BlockSpec((H0, PACKED_W_COLS), lambda i: (0, 0)),   # w1|w2/w3
                pl.BlockSpec((1, PACKED_B_COLS), lambda i: (0, 0)),    # biases
            ],
            out_specs=pl.BlockSpec((tb, OUT_PAD), lambda i: (i, 0)),
        ),
        compiler_params=pltpu.CompilerParams(
            # batch axis is embarrassingly parallel -> shards across v7x's two
            # TensorCores when grid > 1; no-op on v5e/v6e (single TC).
            dimension_semantics=("parallel",),
            vmem_limit_bytes=vmem_limit,
        ),
        cost_estimate=pl.CostEstimate(
            flops=flops, transcendentals=0, bytes_accessed=bytes_accessed),
    )(x, packed["w0"], packed["wpk"], packed["bpk"])

    return out[:, :OUT_CH].astype(jnp.float32)


# ------------------------- deterministic parameters ------------------------ #

def xavier_uniform(key, fan_in, fan_out):
    # Matches nn.init.xavier_uniform_ (gain=1); already transposed to (in, out).
    bound = math.sqrt(6.0 / (fan_in + fan_out))
    return jax.random.uniform(key, (fan_in, fan_out), dtype=jnp.float32,
                              minval=-bound, maxval=bound)


def linear_bias(key, fan_in, fan_out):
    # PyTorch nn.Linear default bias init: U(-1/sqrt(fan_in), 1/sqrt(fan_in)).
    bound = 1.0 / math.sqrt(fan_in)
    return jax.random.uniform(key, (1, fan_out), dtype=jnp.float32,
                              minval=-bound, maxval=bound)


def init_dn_params(key, in_channels=IN_CH, out_channels=OUT_CH):
    dims = [in_channels, H0, H1, H2, out_channels]
    params = {}
    keys = jax.random.split(key, 2 * (len(dims) - 1))
    for i in range(len(dims) - 1):
        fi, fo = dims[i], dims[i + 1]
        params[f"w{i}"] = xavier_uniform(keys[2 * i], fi, fo)
        params[f"b{i}"] = linear_bias(keys[2 * i + 1], fi, fo)
    return params


# ------------------------------ reference impls ----------------------------- #

def dn_forward_ref_f32(x, params):
    h = x
    for i in range(4):
        h = jnp.maximum(h @ params[f"w{i}"] + params[f"b{i}"], 0.0)
    return h


def dn_forward_ref_bf16(x, params):
    """Same bf16-weight / f32-accumulate / bf16-store arithmetic as the kernel."""
    h = x.astype(jnp.bfloat16)
    for i in range(4):
        w = params[f"w{i}"].astype(jnp.bfloat16)
        h = jnp.dot(h, w, preferred_element_type=jnp.float32) + params[f"b{i}"]
        h = jnp.maximum(h, 0.0)
        h = h.astype(jnp.bfloat16)          # kernel also stores bf16 at the end
    return h.astype(jnp.float32)


def _check(out, x, params, tag):
    # relative-dominant tolerance vs the bf16-matched reference (accumulation
    # order may differ by ~1 bf16 ULP between MXU and the XLA reference)
    ref_bf16 = dn_forward_ref_bf16(x, params)
    assert jnp.allclose(out, ref_bf16, atol=2e-2, rtol=2e-2), \
        f"{tag}: mismatch vs bf16-matched reference"
    # sanity: bf16 weight/output compression stays close to the pure-f32 MLP
    ref_f32 = dn_forward_ref_f32(x, params)
    max_err = float(jnp.max(jnp.abs(out - ref_f32)))
    assert max_err < 1e-1, f"{tag}: bf16 error vs f32 reference too large: {max_err}"


# ---------------------------------- main ----------------------------------- #

if __name__ == "__main__":
    key = jax.random.PRNGKey(0)
    k_params, k_x1, k_x2 = jax.random.split(key, 3)

    params = init_dn_params(k_params)
    packed = prepare_dn_operands(params)   # packed bf16/f32 operands, built once

    # x plays the role of the DenseNet-3D feature vector (B, 1024).
    batch = 2
    x = jax.random.normal(k_x1, (batch, IN_CH), dtype=jnp.float32)
    out = jax.block_until_ready(dn_forward(x, packed))
    assert out.shape == (batch, OUT_CH)
    _check(out, x, params, "B=2 single-block")

    # exercise the multi-block (>=2 'parallel' grid blocks, ragged tail) path
    batch2 = 40
    x2 = jax.random.normal(k_x2, (batch2, IN_CH), dtype=jnp.float32)
    out2 = jax.block_until_ready(dn_forward(x2, packed))
    assert out2.shape == (batch2, OUT_CH)
    _check(out2, x2, params, "B=40 two-block")

    print("KERNEL_OK")
</pallas_src>

<mosaic_0001>
module attributes {stable_mosaic.version = 11 : i64} {
  func.func @dn_mlp_kernel(%arg0: i32, %arg1: memref<2x1024xf32, #tpu.memory_space<vmem>>, %arg2: memref<1024x512xbf16, #tpu.memory_space<vmem>>, %arg3: memref<512x384xbf16, #tpu.memory_space<vmem>>, %arg4: memref<1x1024xf32, #tpu.memory_space<vmem>>, %arg5: memref<2x128xbf16, #tpu.memory_space<vmem>>) attributes {dimension_semantics = [#tpu.dimension_semantics<parallel>], iteration_bounds = array<i64: 1>, scalar_prefetch = 0 : i64, scratch_operands = 0 : i64, tpu.core_type = #tpu.core_type<tc>, window_params = [{transform_indices = @transform_0, window_bounds = array<i64: 2, 1024>}, {pipeline_mode = #tpu.pipeline_mode<synchronous>, transform_indices = @transform_1, window_bounds = array<i64: 1024, 512>}, {pipeline_mode = #tpu.pipeline_mode<synchronous>, transform_indices = @transform_2, window_bounds = array<i64: 512, 384>}, {pipeline_mode = #tpu.pipeline_mode<synchronous>, transform_indices = @transform_3, window_bounds = array<i64: 1, 1024>}, {transform_indices = @transform_4, window_bounds = array<i64: 2, 128>}]} {
    %c0 = arith.constant 0 : index
    %c0_0 = arith.constant 0 : index
    %0 = vector.load %arg1[%c0, %c0_0] : memref<2x1024xf32, #tpu.memory_space<vmem>>, vector<2x1024xf32>
    %1 = arith.truncf %0 : vector<2x1024xf32> to vector<2x1024xbf16>
    %c0_1 = arith.constant 0 : index
    %c0_2 = arith.constant 0 : index
    %2 = vector.load %arg2[%c0_1, %c0_2] : memref<1024x512xbf16, #tpu.memory_space<vmem>>, vector<1024x512xbf16>
    %cst = arith.constant dense<0.000000e+00> : vector<2x512xf32>
    %3 = tpu.matmul %1, %2, %cst {dimension_numbers = #tpu.dot_dimension_numbers<[1], [0], [0], [1], [0, 0, 1, 1], [], []>} : vector<2x1024xbf16>, vector<1024x512xbf16>, vector<2x512xf32> -> vector<2x512xf32>
    %c0_3 = arith.constant 0 : index
    %c0_4 = arith.constant 0 : index
    %4 = vector.load %arg4[%c0_3, %c0_4] : memref<1x1024xf32, #tpu.memory_space<vmem>>, vector<1x512xf32>
    %5 = vector.broadcast %4 : vector<1x512xf32> to vector<2x512xf32>
    %6 = arith.addf %3, %5 : vector<2x512xf32>
    %cst_5 = arith.constant 0.000000e+00 : f32
    %7 = vector.broadcast %cst_5 : f32 to vector<2x512xf32>
    %8 = arith.maximumf %6, %7 : vector<2x512xf32>
    %9 = arith.truncf %8 : vector<2x512xf32> to vector<2x512xbf16>
    %c0_6 = arith.constant 0 : index
    %c0_7 = arith.constant 0 : index
    %10 = vector.load %arg3[%c0_6, %c0_7] : memref<512x384xbf16, #tpu.memory_space<vmem>>, vector<512x256xbf16>
    %cst_8 = arith.constant dense<0.000000e+00> : vector<2x256xf32>
    %11 = tpu.matmul %9, %10, %cst_8 {dimension_numbers = #tpu.dot_dimension_numbers<[1], [0], [0], [1], [0, 0, 1, 1], [], []>} : vector<2x512xbf16>, vector<512x256xbf16>, vector<2x256xf32> -> vector<2x256xf32>
    %c0_9 = arith.constant 0 : index
    %c512 = arith.constant 512 : index
    %12 = vector.load %arg4[%c0_9, %c512] : memref<1x1024xf32, #tpu.memory_space<vmem>>, vector<1x256xf32>
    %13 = vector.broadcast %12 : vector<1x256xf32> to vector<2x256xf32>
    %14 = arith.addf %11, %13 : vector<2x256xf32>
    %cst_10 = arith.constant 0.000000e+00 : f32
    %15 = vector.broadcast %cst_10 : f32 to vector<2x256xf32>
    %16 = arith.maximumf %14, %15 : vector<2x256xf32>
    %17 = arith.truncf %16 : vector<2x256xf32> to vector<2x256xbf16>
    %c0_11 = arith.constant 0 : index
    %c256 = arith.constant 256 : index
    %18 = vector.load %arg3[%c0_11, %c256] : memref<512x384xbf16, #tpu.memory_space<vmem>>, vector<256x128xbf16>
    %cst_12 = arith.constant dense<0.000000e+00> : vector<2x128xf32>
    %19 = tpu.matmul %17, %18, %cst_12 {dimension_numbers = #tpu.dot_dimension_numbers<[1], [0], [0], [1], [0, 0, 1, 1], [], []>} : vector<2x256xbf16>, vector<256x128xbf16>, vector<2x128xf32> -> vector<2x128xf32>
    %c0_13 = arith.constant 0 : index
    %c768 = arith.constant 768 : index
    %20 = vector.load %arg4[%c0_13, %c768] : memref<1x1024xf32, #tpu.memory_space<vmem>>, vector<1x128xf32>
    %21 = vector.broadcast %20 : vector<1x128xf32> to vector<2x128xf32>
    %22 = arith.addf %19, %21 : vector<2x128xf32>
    %cst_14 = arith.constant 0.000000e+00 : f32
    %23 = vector.broadcast %cst_14 : f32 to vector<2x128xf32>
    %24 = arith.maximumf %22, %23 : vector<2x128xf32>
    %25 = arith.truncf %24 : vector<2x128xf32> to vector<2x128xbf16>
    %c256_15 = arith.constant 256 : index
    %c256_16 = arith.constant 256 : index
    %26 = vector.load %arg3[%c256_15, %c256_16] : memref<512x384xbf16, #tpu.memory_space<vmem>>, vector<128x128xbf16>
    %cst_17 = arith.constant dense<0.000000e+00> : vector<2x128xf32>
    %27 = tpu.matmul %25, %26, %cst_17 {dimension_numbers = #tpu.dot_dimension_numbers<[1], [0], [0], [1], [0, 0, 1, 1], [], []>} : vector<2x128xbf16>, vector<128x128xbf16>, vector<2x128xf32> -> vector<2x128xf32>
    %c0_18 = arith.constant 0 : index
    %c896 = arith.constant 896 : index
    %28 = vector.load %arg4[%c0_18, %c896] : memref<1x1024xf32, #tpu.memory_space<vmem>>, vector<1x128xf32>
    %29 = vector.broadcast %28 : vector<1x128xf32> to vector<2x128xf32>
    %30 = arith.addf %27, %29 : vector<2x128xf32>
    %cst_19 = arith.constant 0.000000e+00 : f32
    %31 = vector.broadcast %cst_19 : f32 to vector<2x128xf32>
    %32 = arith.maximumf %30, %31 : vector<2x128xf32>
    %33 = arith.truncf %32 : vector<2x128xf32> to vector<2x128xbf16>
    %c0_20 = arith.constant 0 : index
    %c0_21 = arith.constant 0 : index
    %34 = vector.load %arg5[%c0_20, %c0_21] : memref<2x128xbf16, #tpu.memory_space<vmem>>, vector<2x128xbf16>
    tpu.vector_store %arg5[%c0_20, %c0_21], %33 {strides = array<i32>} : memref<2x128xbf16, #tpu.memory_space<vmem>>, vector<2x128xbf16>,
    return
  }
  func.func @transform_0(%arg0: i32) -> (i32, i32) {
    %c0_i32 = arith.constant 0 : i32
    %c0_i32_0 = arith.constant 0 : i32
    return %arg0, %c0_i32 : i32, i32
  }
  func.func @transform_1(%arg0: i32) -> (i32, i32) {
    %c0_i32 = arith.constant 0 : i32
    %c0_i32_0 = arith.constant 0 : i32
    %c0_i32_1 = arith.constant 0 : i32
    return %c0_i32, %c0_i32_0 : i32, i32
  }
  func.func @transform_2(%arg0: i32) -> (i32, i32) {
    %c0_i32 = arith.constant 0 : i32
    %c0_i32_0 = arith.constant 0 : i32
    %c0_i32_1 = arith.constant 0 : i32
    return %c0_i32, %c0_i32_0 : i32, i32
  }
  func.func @transform_3(%arg0: i32) -> (i32, i32) {
    %c0_i32 = arith.constant 0 : i32
    %c0_i32_0 = arith.constant 0 : i32
    %c0_i32_1 = arith.constant 0 : i32
    return %c0_i32, %c0_i32_0 : i32, i32
  }
  func.func @transform_4(%arg0: i32) -> (i32, i32) {
    %c0_i32 = arith.constant 0 : i32
    %c0_i32_0 = arith.constant 0 : i32
    return %arg0, %c0_i32 : i32, i32
  }
}

</mosaic_0001>

<bundles_post_ra>
// kernel: tpu_custom_call.1
= control target key start
LH: loop header
LB: loop body
LE: loop exit
PB: predicated region body
PF: predicated region fallthrough
CT: control target
= control target key end

     0   :  { %9 = vsyncpa [#allocation3], 0  ;;  %s3986_s0 = inlined_call_operand.hbm [shape: f32[2,1024], index: 0, kind: input, shape index: {}]   ;;  %s3987_s1 = inlined_call_operand.hbm [shape: bf16[1024,512], index: 1, kind: input, shape index: {}]   ;;  %s3988_s2 = inlined_call_operand.hbm [shape: bf16[512,384], index: 2, kind: input, shape index: {}]   ;;  %s3989_s3 = inlined_call_operand.vmem [shape: f32[1,1024], index: 3, kind: input, shape index: {}]   ;;  %s3990_s4 = inlined_call_operand.hbm [shape: bf16[2,128], index: 4, kind: output, shape index: {}]  }
   0x1   :  { %10 = vsyncpa [#allocation6], 0 }
   0x2   :  { %11 = vsyncpa [#allocation4], 0  ;;  %s3837_s15 = smov [#allocation5]   ;;  %s3743_s19 = scalar_lea.hbm %s3987_s1, 32768 }
   0x3   :  { %s27_s16 = sshll.u32 %s3837_s15, 4  ;;  %p3744_p0 = scmp.ne.s32.totalorder %s3987_s1, %s3743_s19  ;;  %s28_s16 = int_to_ptr.vmem [resolvable:$true] %s27_s16 }
   0x4   :  { %p3747_p1 = scmp.lt.u32.totalorder %s3743_s19, %s3987_s1 }
   0x6   :  { %p3749_p2 = pnand %p3747_p1, %p3744_p0 }
   0x8   :  { %3752 = shalt.err (!%p3749_p2)
}
   0x9   :  { %s3753_s24 = scalar_lea.vmem %s28_s16, 32768  ;;  %p3758_p4 = scmp.lt.s32.totalorder %s28_s16, %s28_s16 }
   0xa   :  { %p3754_p3 = scmp.ne.s32.totalorder %s28_s16, %s3753_s24  ;;  %p3759_p5 = scmp.lt.s32.totalorder %s3753_s24, %s3753_s24 }
   0xc   :  { %p3760_p6 = por %p3759_p5, %p3758_p4 }
   0xe   :  { %p3761_p7 = pnand %p3760_p6, %p3754_p3 }
  0x10   :  { %3764 = shalt.err (!%p3761_p7)
}
  0x11   :  { %s3838_s25 = smov 256   ;;  %s3839_s26 = smov 16  }
  0x12   :  { %33 = dma.hbm_to_vmem [thread:$0]  %s3987_s1, 32768, %s28_s16, [#allocation6], %s3838_s25, %s3838_s25, %s3839_s26  }
  0x13   :  { %s3840_s29 = smov [#allocation2]   ;;  %s3841_s5 = smov [#allocation7]  }
  0x14   :  { %s18_s30 = sshll.u32 %s3840_s29, 4  ;;  %s39_s6 = sshll.u32 %s3841_s5, 4  ;;  %s19_s30 = int_to_ptr.vmem [resolvable:$true] %s18_s30  ;;  %s40_s6 = int_to_ptr.vmem [resolvable:$true] %s39_s6 }
  0x15   :  { %s3765_s9 = scalar_lea.hbm %s3986_s0, 256 }
  0x16   :  { %p3766_p8 = scmp.ne.s32.totalorder %s3986_s0, %s3765_s9  ;;  %p3769_p9 = scmp.lt.u32.totalorder %s3765_s9, %s3986_s0 }
  0x18   :  { %p3771_p10 = pnand %p3769_p9, %p3766_p8 }
  0x1a   :  { %3774 = shalt.err (!%p3771_p10)
}
  0x1b   :  { %s3775_s1 = scalar_lea.vmem %s19_s30, 256  ;;  %p3780_p12 = scmp.lt.s32.totalorder %s19_s30, %s19_s30 }
  0x1c   :  { %p3776_p11 = scmp.ne.s32.totalorder %s19_s30, %s3775_s1  ;;  %p3781_p13 = scmp.lt.s32.totalorder %s3775_s1, %s3775_s1 }
  0x1e   :  { %p3782_p0 = por %p3781_p13, %p3780_p12 }
  0x20   :  { %p3783_p1 = pnand %p3782_p0, %p3776_p11 }
  0x22   :  { %3786 = shalt.err (!%p3783_p1)
}
  0x23   :  { %21 = dma.hbm_to_vmem [thread:$0]  %s3986_s0, 256, %s19_s30, [#allocation3]  }
  0x24   :  { %s3787_s18 = scalar_lea.hbm %s3988_s2, 12288 }
  0x25   :  { %p3788_p2 = scmp.ne.s32.totalorder %s3988_s2, %s3787_s18  ;;  %p3791_p3 = scmp.lt.u32.totalorder %s3787_s18, %s3988_s2 }
  0x27   :  { %p3793_p4 = pnand %p3791_p3, %p3788_p2 }
  0x29   :  { %3796 = shalt.err (!%p3793_p4)
}
  0x2a   :  { %s3797_s23 = scalar_lea.vmem %s40_s6, 12288  ;;  %p3802_p6 = scmp.lt.s32.totalorder %s40_s6, %s40_s6 }
  0x2b   :  { %p3798_p5 = scmp.ne.s32.totalorder %s40_s6, %s3797_s23  ;;  %p3803_p7 = scmp.lt.s32.totalorder %s3797_s23, %s3797_s23 }
  0x2d   :  { %p3804_p8 = por %p3803_p7, %p3802_p6 }
  0x2f   :  { %p3805_p9 = pnand %p3804_p8, %p3798_p5 }
  0x31   :  { %3808 = shalt.err (!%p3805_p9)
}
  0x32   :  { %s3842_s0 = smov 192   ;;  %s3843_s24 = smov 12  }
  0x33   :  { %45 = dma.hbm_to_vmem [thread:$0]  %s3988_s2, 12288, %s40_s6, [#allocation6], %s3842_s0, %s3842_s0, %s3843_s24  }
  0x34   :  { %3831 = dma.done.wait [#allocation3], 256  }
  0x35   :  { %3832 = vsyncadd [#allocation3], 4294967040 }
  0x36   :  { %3833 = dma.done.wait [#allocation6], 45056  }
  0x37   :  { %3834 = vsyncadd [#allocation6], 4294922240  ;;  %v3237_v0 = vld [vmem:[#allocation5 + $0x4] ss:$16 sps:$4 sm:$0xff]   ;;  %v3239_v1 = vld [vmem:[#allocation5 + $0xc] ss:$16 sps:$4 sm:$0xff]   ;;  %v66_v38 = vlaneseq }
  0x38   :  { %1670 = vmatprep.subr.bf16.mxu0 %v3237_v0  ;;  %v3241_v2 = vld [vmem:[#allocation5] ss:$16 sps:$4 sm:$0xff]   ;;  %v3242_v3 = vld [vmem:[#allocation5 + $0x8] ss:$16 sps:$4 sm:$0xff]   ;;  %1834 = vmatprep.subr.bf16.mxu1 %v3239_v1  ;;  %v3243_v4 = vld [vmem:[#allocation5 + $0x24] ss:$16 sps:$4 sm:$0xff]  }
  0x39   :  { %1671 = vmatpush1.bf16.msra.mxu0 %v3241_v2  ;;  %1835 = vmatpush1.bf16.msra.mxu1 %v3242_v3  ;;  %v3245_v5 = vld [vmem:[#allocation5 + $0x2c] ss:$16 sps:$4 sm:$0xff]   ;;  %v3247_v6 = vld [vmem:[#allocation5 + $0x20] ss:$16 sps:$4 sm:$0xff]   ;;  %v3248_v7 = vld [vmem:[#allocation5 + $0x28] ss:$16 sps:$4 sm:$0xff]  }
  0x3a   :  { %1672 = vmatprep.subr.bf16.mxu0 %v3243_v4  ;;  %1836 = vmatprep.subr.bf16.mxu1 %v3245_v5  ;;  %v3249_v8 = vld [vmem:[#allocation5 + $0x44] ss:$16 sps:$4 sm:$0xff]   ;;  %v3251_v9 = vld [vmem:[#allocation5 + $0x4c] ss:$16 sps:$4 sm:$0xff]   ;;  %v3253_v10 = vld [vmem:[#allocation5 + $0x40] ss:$16 sps:$4 sm:$0xff]  }
  0x3b   :  { %v3254_v11 = vld [vmem:[#allocation5 + $0x48] ss:$16 sps:$4 sm:$0xff]   ;;  %v3255_v12 = vld [vmem:[#allocation5 + $0x64] ss:$16 sps:$4 sm:$0xff]   ;;  %v3257_v13 = vld [vmem:[#allocation5 + $0x6c] ss:$16 sps:$4 sm:$0xff]  }
  0x3c   :  { %v3259_v14 = vld [vmem:[#allocation5 + $0x60] ss:$16 sps:$4 sm:$0xff]   ;;  %v3260_v15 = vld [vmem:[#allocation5 + $0x68] ss:$16 sps:$4 sm:$0xff]   ;;  %v3261_v16 = vld [vmem:[#allocation5 + $0x84] ss:$16 sps:$4 sm:$0xff]  }
  0x3d   :  { %1673 = vmatpush1.bf16.msra.mxu0 %v3247_v6  ;;  %1837 = vmatpush1.bf16.msra.mxu1 %v3248_v7  ;;  %v3263_v17 = vld [vmem:[#allocation5 + $0x8c] ss:$16 sps:$4 sm:$0xff]   ;;  %v3265_v18 = vld [vmem:[#allocation5 + $0x80] ss:$16 sps:$4 sm:$0xff]   ;;  %v3266_v19 = vld [vmem:[#allocation5 + $0x88] ss:$16 sps:$4 sm:$0xff]  }
  0x3e   :  { %1674 = vmatprep.subr.bf16.mxu0 %v3249_v8  ;;  %1838 = vmatprep.subr.bf16.mxu1 %v3251_v9  ;;  %v3267_v20 = vld [vmem:[#allocation5 + $0xa4] ss:$16 sps:$4 sm:$0xff]   ;;  %v3269_v21 = vld [vmem:[#allocation5 + $0xac] ss:$16 sps:$4 sm:$0xff]   ;;  %v3271_v22 = vld [vmem:[#allocation5 + $0xa0] ss:$16 sps:$4 sm:$0xff]  }
  0x3f   :  { %v3272_v23 = vld [vmem:[#allocation5 + $0xa8] ss:$16 sps:$4 sm:$0xff]   ;;  %v3273_v24 = vld [vmem:[#allocation5 + $0xc4] ss:$16 sps:$4 sm:$0xff]   ;;  %v3275_v25 = vld [vmem:[#allocation5 + $0xcc] ss:$16 sps:$4 sm:$0xff]  }
  0x40   :  { %v3277_v26 = vld [vmem:[#allocation5 + $0xc0] ss:$16 sps:$4 sm:$0xff]   ;;  %v3278_v27 = vld [vmem:[#allocation5 + $0xc8] ss:$16 sps:$4 sm:$0xff]   ;;  %v3279_v28 = vld [vmem:[#allocation5 + $0xe4] ss:$16 sps:$4 sm:$0xff]  }
  0x41   :  { %1675 = vmatpush1.bf16.msra.mxu0 %v3253_v10  ;;  %1839 = vmatpush1.bf16.msra.mxu1 %v3254_v11  ;;  %v3281_v29 = vld [vmem:[#allocation5 + $0xec] ss:$16 sps:$4 sm:$0xff]   ;;  %v3283_v30 = vld [vmem:[#allocation5 + $0xe0] ss:$16 sps:$4 sm:$0xff]   ;;  %v3284_v31 = vld [vmem:[#allocation5 + $0xe8] ss:$16 sps:$4 sm:$0xff]  }
  0x42   :  { %1676 = vmatprep.subr.bf16.mxu0 %v3255_v12  ;;  %1840 = vmatprep.subr.bf16.mxu1 %v3257_v13  ;;  %v3285_v32 = vld [vmem:[#allocation5 + $0x104] ss:$16 sps:$4 sm:$0xff]   ;;  %v3287_v33 = vld [vmem:[#allocation5 + $0x10c] ss:$16 sps:$4 sm:$0xff]   ;;  %v3289_v34 = vld [vmem:[#allocation5 + $0x100] ss:$16 sps:$4 sm:$0xff]  }
  0x43   :  { %v3290_v35 = vld [vmem:[#allocation5 + $0x108] ss:$16 sps:$4 sm:$0xff]   ;;  %v3844_v36 = vmov 1983009808   ;;  %v3291_v39 = vld [vmem:[#allocation5 + $0x124] ss:$16 sps:$4 sm:$0xff]  }
  0x44   :  { %v64_v37 = vunpack.c.l.s4 %v3844_v36  ;;  %v3293_v40 = vld [vmem:[#allocation5 + $0x12c] ss:$16 sps:$4 sm:$0xff]   ;;  %v3295_v41 = vld [vmem:[#allocation5 + $0x120] ss:$16 sps:$4 sm:$0xff]   ;;  %v3909_v43 = vshrl.u32 %v66_v38, 7  ;;  %vm3846_vm0 = vmmov 0  }
  0x45   :  { %1677 = vmatpush1.bf16.msra.mxu0 %v3259_v14  ;;  %1841 = vmatpush1.bf16.msra.mxu1 %v3260_v15  ;;  %v3296_v44 = vld [vmem:[#allocation5 + $0x128] ss:$16 sps:$4 sm:$0xff]   ;;  %v3297_v45 = vld [vmem:[#allocation5 + $0x144] ss:$16 sps:$4 sm:$0xff]   ;;  %v3299_v46 = vld [vmem:[#allocation5 + $0x14c] ss:$16 sps:$4 sm:$0xff]  }
  0x46   :  { %1678 = vmatprep.subr.bf16.mxu0 %v3261_v16  ;;  %1842 = vmatprep.subr.bf16.mxu1 %v3263_v17  ;;  %v65_v42 = vunpack.c.0.s8 %v64_v37  ;;  %v3301_v47 = vld [vmem:[#allocation5 + $0x140] ss:$16 sps:$4 sm:$0xff]   ;;  %v3302_v48 = vld [vmem:[#allocation5 + $0x148] ss:$16 sps:$4 sm:$0xff]   ;;  %v3303_v50 = vld [vmem:[#allocation5 + $0x164] ss:$16 sps:$4 sm:$0xff]  }
  0x47   :  { %v3305_v51 = vld [vmem:[#allocation5 + $0x16c] ss:$16 sps:$4 sm:$0xff]   ;;  %v58_v52 = vld [vmem:[#allocation2] sm:$0xff]  ;;  %v3308_v55 = vld [vmem:[#allocation5 + $0x168] ss:$16 sps:$4 sm:$0xff]   ;;  %s3847_s8 = smov [#allocation8]  }
  0x48   :  { %v3912_v49 = vsub.s32 %v65_v42, %v3909_v43  ;;  %v3307_v53 = vld [vmem:[#allocation5 + $0x160] ss:$16 sps:$4 sm:$0xff]   ;;  %v3309_v56 = vld [vmem:[#allocation5 + $0x184] ss:$16 sps:$4 sm:$0xff]   ;;  %v3311_v57 = vld [vmem:[#allocation5 + $0x18c] ss:$16 sps:$4 sm:$0xff]   ;;  %v62_v4 = vcombine.high %v58_v52, %v58_v52 }
  0x49   :  { %1679 = vmatpush1.bf16.msra.mxu0 %v3265_v18  ;;  %1843 = vmatpush1.bf16.msra.mxu1 %v3266_v19  ;;  %v3313_v59 = vld [vmem:[#allocation5 + $0x180] ss:$16 sps:$4 sm:$0xff]   ;;  %v3314_v61 = vld [vmem:[#allocation5 + $0x188] ss:$16 sps:$4 sm:$0xff]   ;;  %v3315_v62 = vld [vmem:[#allocation5 + $0x1a4] ss:$16 sps:$4 sm:$0xff]  }
  0x4a   :  { %1680 = vmatprep.subr.bf16.mxu0 %v3267_v20  ;;  %1844 = vmatprep.subr.bf16.mxu1 %v3269_v21  ;;  %v69_v54 = vrot.slane %v58_v52, %v3912_v49  ;;  %v3317_v63 = vld [vmem:[#allocation5 + $0x1ac] ss:$16 sps:$4 sm:$0xff]   ;;  %v3319_v0 = vld [vmem:[#allocation5 + $0x1a0] ss:$16 sps:$4 sm:$0xff]   ;;  %v3320_v1 = vld [vmem:[#allocation5 + $0x1a8] ss:$16 sps:$4 sm:$0xff]   ;;  %v3916_v9 = vrot.slane %v62_v4, %v3912_v49 }
  0x4b   :  { %v3321_v2 = vld [vmem:[#allocation5 + $0x1c4] ss:$16 sps:$4 sm:$0xff]   ;;  %v3323_v3 = vld [vmem:[#allocation5 + $0x1cc] ss:$16 sps:$4 sm:$0xff]   ;;  %v3325_v5 = vld [vmem:[#allocation5 + $0x1c0] ss:$16 sps:$4 sm:$0xff]  }
  0x4c   :  { %v77_v58 = vcombine.high %v69_v54, %v69_v54  ;;  %v3326_v6 = vld [vmem:[#allocation5 + $0x1c8] ss:$16 sps:$4 sm:$0xff]   ;;  %v3327_v7 = vld [vmem:[#allocation5 + $0x1e4] ss:$16 sps:$4 sm:$0xff]   ;;  %v3329_v8 = vld [vmem:[#allocation5 + $0x1ec] ss:$16 sps:$4 sm:$0xff]   ;;  %v78_v14 = vcombine.high %v3916_v9, %v3916_v9  ;;  %v104_v16 = vpack.c.bf16 %v69_v54, %v69_v54 }
  0x4d   :  { %1681 = vmatpush1.bf16.msra.mxu0 %v3271_v22  ;;  %1845 = vmatpush1.bf16.msra.mxu1 %v3272_v23  ;;  %v3331_v10 = vld [vmem:[#allocation5 + $0x1e0] ss:$16 sps:$4 sm:$0xff]   ;;  %v3332_v11 = vld [vmem:[#allocation5 + $0x1e8] ss:$16 sps:$4 sm:$0xff]   ;;  %v3336_v12 = vld [vmem:[#allocation5 + $0x204] ss:$16 sps:$4 sm:$0xff]  }
  0x4e   :  { %1682 = vmatprep.subr.bf16.mxu0 %v3273_v24  ;;  %1846 = vmatprep.subr.bf16.mxu1 %v3275_v25  ;;  %v105_v60 = vpack.c.bf16 %v77_v58, %v77_v58  ;;  %v3339_v13 = vld [vmem:[#allocation5 + $0x20c] ss:$16 sps:$4 sm:$0xff]   ;;  %v3334_v15 = vld [vmem:[#allocation5 + $0x200] ss:$16 sps:$4 sm:$0xff]   ;;  %v3337_v17 = vld [vmem:[#allocation5 + $0x208] ss:$16 sps:$4 sm:$0xff]   ;;  %v107_v20 = vpack.c.bf16 %v78_v14, %v78_v14 }
  0x4f   :  { %v3342_v18 = vld [vmem:[#allocation5 + $0x224] ss:$16 sps:$4 sm:$0xff]   ;;  %v3345_v19 = vld [vmem:[#allocation5 + $0x22c] ss:$16 sps:$4 sm:$0xff]   ;;  %v3340_v21 = vld [vmem:[#allocation5 + $0x220] ss:$16 sps:$4 sm:$0xff]  }
  0x50   :  { %1702 = vmatprep.mubr.bf16.mxu0 %v105_v60  ;;  %1866 = vmatprep.mubr.bf16.mxu1 %v105_v60  ;;  %v3343_v22 = vld [vmem:[#allocation5 + $0x228] ss:$16 sps:$4 sm:$0xff]   ;;  %v3348_v23 = vld [vmem:[#allocation5 + $0x244] ss:$16 sps:$4 sm:$0xff]   ;;  %v3351_v24 = vld [vmem:[#allocation5 + $0x24c] ss:$16 sps:$4 sm:$0xff]  }
  0x51   :  { %1683 = vmatpush1.bf16.msra.mxu0 %v3277_v26  ;;  %1847 = vmatpush1.bf16.msra.mxu1 %v3278_v27  ;;  %v3346_v25 = vld [vmem:[#allocation5 + $0x240] ss:$16 sps:$4 sm:$0xff]   ;;  %v3349_v26 = vld [vmem:[#allocation5 + $0x248] ss:$16 sps:$4 sm:$0xff]   ;;  %v3354_v27 = vld [vmem:[#allocation5 + $0x264] ss:$16 sps:$4 sm:$0xff]  }
  0x52   :  { %1684 = vmatprep.subr.bf16.mxu0 %v3279_v28  ;;  %1848 = vmatprep.subr.bf16.mxu1 %v3281_v29  ;;  %v3357_v28 = vld [vmem:[#allocation5 + $0x26c] ss:$16 sps:$4 sm:$0xff]   ;;  %v3352_v29 = vld [vmem:[#allocation5 + $0x260] ss:$16 sps:$4 sm:$0xff]   ;;  %v3367_v38 = vld [vmem:[#allocation5 + $0x2a8] ss:$16 sps:$4 sm:$0xff]  }
  0x53   :  { %v3369_v36 = vld [vmem:[#allocation5 + $0x2ac] ss:$16 sps:$4 sm:$0xff]   ;;  %v3364_v37 = vld [vmem:[#allocation5 + $0x2a0] ss:$16 sps:$4 sm:$0xff]   ;;  %v3373_v42 = vld [vmem:[#allocation5 + $0x2c8] ss:$16 sps:$4 sm:$0xff]  }
  0x54   :  { %v3385_v52 = vld [vmem:[#allocation5 + $0x308] ss:$16 sps:$4 sm:$0xff]   ;;  %v3393_v54 = vld [vmem:[#allocation5 + $0x32c] ss:$16 sps:$4 sm:$0xff]   ;;  %v3426_v14 = vld [vmem:[#allocation5 + $0x3e4] ss:$16 sps:$4 sm:$0xff]  }
  0x55   :  { %1685 = vmatpush1.bf16.msra.mxu0 %v3283_v30  ;;  %1849 = vmatpush1.bf16.msra.mxu1 %v3284_v31  ;;  %v3355_v30 = vld [vmem:[#allocation5 + $0x268] ss:$16 sps:$4 sm:$0xff]   ;;  %v3360_v31 = vld [vmem:[#allocation5 + $0x284] ss:$16 sps:$4 sm:$0xff]   ;;  %v3399_v58 = vld [vmem:[#allocation5 + $0x34c] ss:$16 sps:$4 sm:$0xff]  }
  0x56   :  { %1686 = vmatprep.subr.bf16.mxu0 %v3285_v32  ;;  %1850 = vmatprep.subr.bf16.mxu1 %v3287_v33  ;;  %v3363_v32 = vld [vmem:[#allocation5 + $0x28c] ss:$16 sps:$4 sm:$0xff]   ;;  %v3358_v33 = vld [vmem:[#allocation5 + $0x280] ss:$16 sps:$4 sm:$0xff]   ;;  %v3397_v60 = vld [vmem:[#allocation5 + $0x348] ss:$16 sps:$4 sm:$0xff]  }
  0x57   :  { %v3409_v4 = vld [vmem:[#allocation5 + $0x388] ss:$16 sps:$4 sm:$0xff]   ;;  %s2785_s9 = sshll.u32 %s3847_s8, 4  ;;  %s2786_s9 = int_to_ptr.vmem [resolvable:$true] %s2785_s9 }
  0x58   :  { %s3809_s10 = scalar_lea.vmem %s2786_s9, 16  ;;  %s3813_s11 = scalar_lea.vmem %s2786_s9, 32 }
  0x59   :  { %1687 = vmatpush1.bf16.msra.mxu0 %v3289_v34  ;;  %1851 = vmatpush1.bf16.msra.mxu1 %v3290_v35  ;;  %v3361_v34 = vld [vmem:[#allocation5 + $0x288] ss:$16 sps:$4 sm:$0xff]   ;;  %v3366_v35 = vld [vmem:[#allocation5 + $0x2a4] ss:$16 sps:$4 sm:$0xff]   ;;  %p3810_p10 = scmp.ne.s32.totalorder %s2786_s9, %s3809_s10  ;;  %p3814_p11 = scmp.lt.s32.totalorder %s2786_s9, %s2786_s9 }
  0x5a   :  { %1688 = vmatprep.subr.bf16.mxu0 %v3291_v39  ;;  %1852 = vmatprep.subr.bf16.mxu1 %v3293_v40  ;;  %v3372_v39 = vld [vmem:[#allocation5 + $0x2c4] ss:$16 sps:$4 sm:$0xff]   ;;  %v3375_v40 = vld [vmem:[#allocation5 + $0x2cc] ss:$16 sps:$4 sm:$0xff]   ;;  %p3815_p12 = scmp.lt.s32.totalorder %s3813_s11, %s3809_s10 }
  0x5c   :  { %p3816_p13 = por %p3815_p12, %p3814_p11 }
  0x5d   :  { %1689 = vmatpush1.bf16.msra.mxu0 %v3295_v41  ;;  %1853 = vmatpush1.bf16.msra.mxu1 %v3296_v44  ;;  %v3370_v41 = vld [vmem:[#allocation5 + $0x2c0] ss:$16 sps:$4 sm:$0xff]   ;;  %v3378_v44 = vld [vmem:[#allocation5 + $0x2e4] ss:$16 sps:$4 sm:$0xff]  }
  0x5e   :  { %1690 = vmatprep.subr.bf16.mxu0 %v3297_v45  ;;  %1854 = vmatprep.subr.bf16.mxu1 %v3299_v46  ;;  %v3381_v45 = vld [vmem:[#allocation5 + $0x2ec] ss:$16 sps:$4 sm:$0xff]   ;;  %v3376_v46 = vld [vmem:[#allocation5 + $0x2e0] ss:$16 sps:$4 sm:$0xff]   ;;  %p3817_p0 = pnand %p3816_p13, %p3810_p10 }
  0x61   :  { %1691 = vmatpush1.bf16.msra.mxu0 %v3301_v47  ;;  %1855 = vmatpush1.bf16.msra.mxu1 %v3302_v48  ;;  %v3379_v47 = vld [vmem:[#allocation5 + $0x2e8] ss:$16 sps:$4 sm:$0xff]   ;;  %v3384_v48 = vld [vmem:[#allocation5 + $0x304] ss:$16 sps:$4 sm:$0xff]  }
  0x62   :  { %1692 = vmatprep.subr.bf16.mxu0 %v3303_v50  ;;  %1856 = vmatprep.subr.bf16.mxu1 %v3305_v51  ;;  %v3387_v50 = vld [vmem:[#allocation5 + $0x30c] ss:$16 sps:$4 sm:$0xff]   ;;  %v3382_v51 = vld [vmem:[#allocation5 + $0x300] ss:$16 sps:$4 sm:$0xff]  }
  0x65   :  { %1693 = vmatpush1.bf16.msra.mxu0 %v3307_v53  ;;  %1857 = vmatpush1.bf16.msra.mxu1 %v3308_v55  ;;  %v3390_v53 = vld [vmem:[#allocation5 + $0x324] ss:$16 sps:$4 sm:$0xff]   ;;  %v3388_v55 = vld [vmem:[#allocation5 + $0x320] ss:$16 sps:$4 sm:$0xff]  }
  0x66   :  { %1694 = vmatprep.subr.bf16.mxu0 %v3309_v56  ;;  %1858 = vmatprep.subr.bf16.mxu1 %v3311_v57  ;;  %v3391_v56 = vld [vmem:[#allocation5 + $0x328] ss:$16 sps:$4 sm:$0xff]   ;;  %v3396_v57 = vld [vmem:[#allocation5 + $0x344] ss:$16 sps:$4 sm:$0xff]  }
  0x69   :  { %1695 = vmatpush1.bf16.msra.mxu0 %v3313_v59  ;;  %1859 = vmatpush1.bf16.msra.mxu1 %v3314_v61  ;;  %v3394_v59 = vld [vmem:[#allocation5 + $0x340] ss:$16 sps:$4 sm:$0xff]   ;;  %v3402_v61 = vld [vmem:[#allocation5 + $0x364] ss:$16 sps:$4 sm:$0xff]  }
  0x6a   :  { %1696 = vmatprep.subr.bf16.mxu0 %v3315_v62  ;;  %1860 = vmatprep.subr.bf16.mxu1 %v3317_v63  ;;  %v3405_v62 = vld [vmem:[#allocation5 + $0x36c] ss:$16 sps:$4 sm:$0xff]   ;;  %v3400_v63 = vld [vmem:[#allocation5 + $0x360] ss:$16 sps:$4 sm:$0xff]  }
  0x6d   :  { %1697 = vmatpush1.bf16.msra.mxu0 %v3319_v0  ;;  %1861 = vmatpush1.bf16.msra.mxu1 %v3320_v1  ;;  %v3403_v0 = vld [vmem:[#allocation5 + $0x368] ss:$16 sps:$4 sm:$0xff]   ;;  %v3408_v1 = vld [vmem:[#allocation5 + $0x384] ss:$16 sps:$4 sm:$0xff]  }
  0x6e   :  { %1698 = vmatprep.subr.bf16.mxu0 %v3321_v2  ;;  %1862 = vmatprep.subr.bf16.mxu1 %v3323_v3  ;;  %v3411_v2 = vld [vmem:[#allocation5 + $0x38c] ss:$16 sps:$4 sm:$0xff]   ;;  %v3406_v3 = vld [vmem:[#allocation5 + $0x380] ss:$16 sps:$4 sm:$0xff]  }
  0x71   :  { %1699 = vmatpush1.bf16.msra.mxu0 %v3325_v5  ;;  %1863 = vmatpush1.bf16.msra.mxu1 %v3326_v6  ;;  %v3414_v5 = vld [vmem:[#allocation5 + $0x3a4] ss:$16 sps:$4 sm:$0xff]   ;;  %v3417_v6 = vld [vmem:[#allocation5 + $0x3ac] ss:$16 sps:$4 sm:$0xff]  }
  0x72   :  { %1700 = vmatprep.subr.bf16.mxu0 %v3327_v7  ;;  %1864 = vmatprep.subr.bf16.mxu1 %v3329_v8  ;;  %v3412_v7 = vld [vmem:[#allocation5 + $0x3a0] ss:$16 sps:$4 sm:$0xff]   ;;  %v3415_v8 = vld [vmem:[#allocation5 + $0x3a8] ss:$16 sps:$4 sm:$0xff]  }
  0x75   :  { %1701 = vmatpush1.bf16.msra.mxu0 %v3331_v10  ;;  %1865 = vmatpush1.bf16.msra.mxu1 %v3332_v11  ;;  %v3420_v10 = vld [vmem:[#allocation5 + $0x3c4] ss:$16 sps:$4 sm:$0xff]   ;;  %v3423_v11 = vld [vmem:[#allocation5 + $0x3cc] ss:$16 sps:$4 sm:$0xff]  }
  0x76   :  { %1711 = vmatprep.subr.bf16.mxu0 %v3336_v12  ;;  %1875 = vmatprep.subr.bf16.mxu1 %v3339_v13  ;;  %v3418_v12 = vld [vmem:[#allocation5 + $0x3c0] ss:$16 sps:$4 sm:$0xff]   ;;  %v3421_v13 = vld [vmem:[#allocation5 + $0x3c8] ss:$16 sps:$4 sm:$0xff]  }
  0x78   :  { %1703 = vmatmul.mubr.bf16.vlgmr.msra.gmra.mrb[0].mxu0 %v104_v16  ;;  %1867 = vmatmul.mubr.bf16.vlgmr.msra.gmra.mrb[0].mxu1 %v104_v16  ;;  %v3424_v16 = vld [vmem:[#allocation5 + $0x3e0] ss:$16 sps:$4 sm:$0xff]  }
  0x79   :  { %1712 = vmatpush1.bf16.msra.mxu0 %v3334_v15  ;;  %1876 = vmatpush1.bf16.msra.mxu1 %v3337_v17  ;;  %v3429_v15 = vld [vmem:[#allocation5 + $0x3ec] ss:$16 sps:$4 sm:$0xff]   ;;  %v3427_v17 = vld [vmem:[#allocation5 + $0x3e8] ss:$16 sps:$4 sm:$0xff]  }
  0x7a   :  { %1713 = vmatprep.subr.bf16.mxu0 %v3342_v18  ;;  %1877 = vmatprep.subr.bf16.mxu1 %v3345_v19  ;;  %v3432_v18 = vld [vmem:[#allocation5 + $0x404] ss:$16 sps:$4 sm:$0xff]   ;;  %v3435_v19 = vld [vmem:[#allocation5 + $0x40c] ss:$16 sps:$4 sm:$0xff]  }
  0x7b   :  { %1743 = vmatprep.mubr.bf16.mxu0 %v107_v20  ;;  %1907 = vmatprep.mubr.bf16.mxu1 %v107_v20  ;;  %v3430_v20 = vld [vmem:[#allocation5 + $0x400] ss:$16 sps:$4 sm:$0xff]  }
  0x7d   :  { %1714 = vmatpush1.bf16.msra.mxu0 %v3340_v21  ;;  %1878 = vmatpush1.bf16.msra.mxu1 %v3343_v22  ;;  %v106_v21 = vpack.c.bf16 %v3916_v9, %v3916_v9  ;;  %v3433_v22 = vld [vmem:[#allocation5 + $0x408] ss:$16 sps:$4 sm:$0xff]   ;;  %v3436_v9 = vld [vmem:[#allocation5 + $0x420] ss:$16 sps:$4 sm:$0xff]  }
  0x7e   :  { %1715 = vmatprep.subr.bf16.mxu0 %v3348_v23  ;;  %1879 = vmatprep.subr.bf16.mxu1 %v3351_v24  ;;  %v3922_v23 = vld [vmem:[#allocation2 + $0x8] sm:$0xff]  ;;  %v3438_v24 = vld [vmem:[#allocation5 + $0x424] ss:$16 sps:$4 sm:$0xff]  }
  0x81   :  { %1716 = vmatpush1.bf16.msra.mxu0 %v3346_v25  ;;  %1880 = vmatpush1.bf16.msra.mxu1 %v3349_v26  ;;  %v3441_v25 = vld [vmem:[#allocation5 + $0x42c] ss:$16 sps:$4 sm:$0xff]   ;;  %v3926_v26 = vrot.slane %v3922_v23, %v3912_v49 }
  0x82   :  { %1717 = vmatprep.subr.bf16.mxu0 %v3354_v27  ;;  %1881 = vmatprep.subr.bf16.mxu1 %v3357_v28  ;;  %v3439_v28 = vld [vmem:[#allocation5 + $0x428] ss:$16 sps:$4 sm:$0xff]  }
  0x83   :  { %v94_v27 = vcombine.high %v3926_v26, %v3926_v26 }
  0x85   :  { %1718 = vmatpush1.bf16.msra.mxu0 %v3352_v29  ;;  %1882 = vmatpush1.bf16.msra.mxu1 %v3355_v30  ;;  %v3444_v29 = vld [vmem:[#allocation5 + $0x444] ss:$16 sps:$4 sm:$0xff]   ;;  %v3447_v30 = vld [vmem:[#allocation5 + $0x44c] ss:$16 sps:$4 sm:$0xff]  }
  0x86   :  { %1719 = vmatprep.subr.bf16.mxu0 %v3360_v31  ;;  %1883 = vmatprep.subr.bf16.mxu1 %v3363_v32  ;;  %v109_v31 = vpack.c.bf16 %v94_v27, %v94_v27  ;;  %v3442_v32 = vld [vmem:[#allocation5 + $0x440] ss:$16 sps:$4 sm:$0xff]  }
  0x87   :  { %v3520_v27 = vld [vmem:[#allocation5 + $0x5e0] ss:$16 sps:$4 sm:$0xff]  }
  0x89   :  { %1720 = vmatpush1.bf16.msra.mxu0 %v3358_v33  ;;  %1884 = vmatpush1.bf16.msra.mxu1 %v3361_v34  ;;  %v3445_v33 = vld [vmem:[#allocation5 + $0x448] ss:$16 sps:$4 sm:$0xff]   ;;  %v3450_v34 = vld [vmem:[#allocation5 + $0x464] ss:$16 sps:$4 sm:$0xff]  }
  0x8a   :  { %1721 = vmatprep.subr.bf16.mxu0 %v3366_v35  ;;  %1885 = vmatprep.subr.bf16.mxu1 %v3369_v36  ;;  %v3453_v35 = vld [vmem:[#allocation5 + $0x46c] ss:$16 sps:$4 sm:$0xff]   ;;  %v3448_v36 = vld [vmem:[#allocation5 + $0x460] ss:$16 sps:$4 sm:$0xff]  }
  0x8d   :  { %1722 = vmatpush1.bf16.msra.mxu0 %v3364_v37  ;;  %1886 = vmatpush1.bf16.msra.mxu1 %v3367_v38  ;;  %v3451_v37 = vld [vmem:[#allocation5 + $0x468] ss:$16 sps:$4 sm:$0xff]   ;;  %v3456_v38 = vld [vmem:[#allocation5 + $0x484] ss:$16 sps:$4 sm:$0xff]  }
  0x8e   :  { %1723 = vmatprep.subr.bf16.mxu0 %v3372_v39  ;;  %1887 = vmatprep.subr.bf16.mxu1 %v3375_v40  ;;  %v3459_v39 = vld [vmem:[#allocation5 + $0x48c] ss:$16 sps:$4 sm:$0xff]   ;;  %v3454_v40 = vld [vmem:[#allocation5 + $0x480] ss:$16 sps:$4 sm:$0xff]  }
  0x91   :  { %1724 = vmatpush1.bf16.msra.mxu0 %v3370_v41  ;;  %1888 = vmatpush1.bf16.msra.mxu1 %v3373_v42  ;;  %v3457_v41 = vld [vmem:[#allocation5 + $0x488] ss:$16 sps:$4 sm:$0xff]   ;;  %v3462_v42 = vld [vmem:[#allocation5 + $0x4a4] ss:$16 sps:$4 sm:$0xff]  }
  0x92   :  { %1725 = vmatprep.subr.bf16.mxu0 %v3378_v44  ;;  %1889 = vmatprep.subr.bf16.mxu1 %v3381_v45  ;;  %v3465_v44 = vld [vmem:[#allocation5 + $0x4ac] ss:$16 sps:$4 sm:$0xff]   ;;  %v3460_v45 = vld [vmem:[#allocation5 + $0x4a0] ss:$16 sps:$4 sm:$0xff]  }
  0x95   :  { %1726 = vmatpush1.bf16.msra.mxu0 %v3376_v46  ;;  %1890 = vmatpush1.bf16.msra.mxu1 %v3379_v47  ;;  %v3463_v46 = vld [vmem:[#allocation5 + $0x4a8] ss:$16 sps:$4 sm:$0xff]   ;;  %v3468_v47 = vld [vmem:[#allocation5 + $0x4c4] ss:$16 sps:$4 sm:$0xff]  }
  0x96   :  { %1727 = vmatprep.subr.bf16.mxu0 %v3384_v48  ;;  %1891 = vmatprep.subr.bf16.mxu1 %v3387_v50  ;;  %v3471_v48 = vld [vmem:[#allocation5 + $0x4cc] ss:$16 sps:$4 sm:$0xff]   ;;  %v3466_v50 = vld [vmem:[#allocation5 + $0x4c0] ss:$16 sps:$4 sm:$0xff]  }
  0x99   :  { %1728 = vmatpush1.bf16.msra.mxu0 %v3382_v51  ;;  %1892 = vmatpush1.bf16.msra.mxu1 %v3385_v52  ;;  %v3469_v51 = vld [vmem:[#allocation5 + $0x4c8] ss:$16 sps:$4 sm:$0xff]   ;;  %v3474_v52 = vld [vmem:[#allocation5 + $0x4e4] ss:$16 sps:$4 sm:$0xff]  }
  0x9a   :  { %1729 = vmatprep.subr.bf16.mxu0 %v3390_v53  ;;  %1893 = vmatprep.subr.bf16.mxu1 %v3393_v54  ;;  %v3477_v53 = vld [vmem:[#allocation5 + $0x4ec] ss:$16 sps:$4 sm:$0xff]   ;;  %v3472_v54 = vld [vmem:[#allocation5 + $0x4e0] ss:$16 sps:$4 sm:$0xff]  }
  0x9d   :  { %1730 = vmatpush1.bf16.msra.mxu0 %v3388_v55  ;;  %1894 = vmatpush1.bf16.msra.mxu1 %v3391_v56  ;;  %v3475_v55 = vld [vmem:[#allocation5 + $0x4e8] ss:$16 sps:$4 sm:$0xff]   ;;  %v3480_v56 = vld [vmem:[#allocation5 + $0x504] ss:$16 sps:$4 sm:$0xff]  }
  0x9e   :  { %1731 = vmatprep.subr.bf16.mxu0 %v3396_v57  ;;  %1895 = vmatprep.subr.bf16.mxu1 %v3399_v58  ;;  %v3483_v57 = vld [vmem:[#allocation5 + $0x50c] ss:$16 sps:$4 sm:$0xff]   ;;  %v3478_v58 = vld [vmem:[#allocation5 + $0x500] ss:$16 sps:$4 sm:$0xff]  }
  0xa1   :  { %1732 = vmatpush1.bf16.msra.mxu0 %v3394_v59  ;;  %1896 = vmatpush1.bf16.msra.mxu1 %v3397_v60  ;;  %v3481_v59 = vld [vmem:[#allocation5 + $0x508] ss:$16 sps:$4 sm:$0xff]   ;;  %v3486_v60 = vld [vmem:[#allocation5 + $0x524] ss:$16 sps:$4 sm:$0xff]  }
  0xa2   :  { %1733 = vmatprep.subr.bf16.mxu0 %v3402_v61  ;;  %1897 = vmatprep.subr.bf16.mxu1 %v3405_v62  ;;  %v3489_v61 = vld [vmem:[#allocation5 + $0x52c] ss:$16 sps:$4 sm:$0xff]   ;;  %v3484_v62 = vld [vmem:[#allocation5 + $0x520] ss:$16 sps:$4 sm:$0xff]  }
  0xa5   :  { %1734 = vmatpush1.bf16.msra.mxu0 %v3400_v63  ;;  %1898 = vmatpush1.bf16.msra.mxu1 %v3403_v0  ;;  %v3487_v63 = vld [vmem:[#allocation5 + $0x528] ss:$16 sps:$4 sm:$0xff]   ;;  %v3492_v0 = vld [vmem:[#allocation5 + $0x544] ss:$16 sps:$4 sm:$0xff]  }
  0xa6   :  { %1735 = vmatprep.subr.bf16.mxu0 %v3408_v1  ;;  %1899 = vmatprep.subr.bf16.mxu1 %v3411_v2  ;;  %v3495_v1 = vld [vmem:[#allocation5 + $0x54c] ss:$16 sps:$4 sm:$0xff]   ;;  %v3490_v2 = vld [vmem:[#allocation5 + $0x540] ss:$16 sps:$4 sm:$0xff]  }
  0xa9   :  { %1736 = vmatpush1.bf16.msra.mxu0 %v3406_v3  ;;  %1900 = vmatpush1.bf16.msra.mxu1 %v3409_v4  ;;  %v3493_v3 = vld [vmem:[#allocation5 + $0x548] ss:$16 sps:$4 sm:$0xff]   ;;  %v3498_v4 = vld [vmem:[#allocation5 + $0x564] ss:$16 sps:$4 sm:$0xff]  }
  0xaa   :  { %1737 = vmatprep.subr.bf16.mxu0 %v3414_v5  ;;  %1901 = vmatprep.subr.bf16.mxu1 %v3417_v6  ;;  %v3501_v5 = vld [vmem:[#allocation5 + $0x56c] ss:$16 sps:$4 sm:$0xff]   ;;  %v3496_v6 = vld [vmem:[#allocation5 + $0x560] ss:$16 sps:$4 sm:$0xff]  }
  0xad   :  { %1738 = vmatpush1.bf16.msra.mxu0 %v3412_v7  ;;  %1902 = vmatpush1.bf16.msra.mxu1 %v3415_v8  ;;  %v3499_v7 = vld [vmem:[#allocation5 + $0x568] ss:$16 sps:$4 sm:$0xff]   ;;  %v3504_v8 = vld [vmem:[#allocation5 + $0x584] ss:$16 sps:$4 sm:$0xff]  }
  0xae   :  { %1739 = vmatprep.subr.bf16.mxu0 %v3420_v10  ;;  %1903 = vmatprep.subr.bf16.mxu1 %v3423_v11  ;;  %v3507_v10 = vld [vmem:[#allocation5 + $0x58c] ss:$16 sps:$4 sm:$0xff]   ;;  %v3502_v11 = vld [vmem:[#allocation5 + $0x580] ss:$16 sps:$4 sm:$0xff]  }
  0xb1   :  { %1740 = vmatpush1.bf16.msra.mxu0 %v3418_v12  ;;  %1904 = vmatpush1.bf16.msra.mxu1 %v3421_v13  ;;  %v3505_v12 = vld [vmem:[#allocation5 + $0x588] ss:$16 sps:$4 sm:$0xff]   ;;  %v3510_v13 = vld [vmem:[#allocation5 + $0x5a4] ss:$16 sps:$4 sm:$0xff]  }
  0xb2   :  { %1741 = vmatprep.subr.bf16.mxu0 %v3426_v14  ;;  %1905 = vmatprep.subr.bf16.mxu1 %v3429_v15  ;;  %v3513_v14 = vld [vmem:[#allocation5 + $0x5ac] ss:$16 sps:$4 sm:$0xff]   ;;  %v3508_v15 = vld [vmem:[#allocation5 + $0x5a0] ss:$16 sps:$4 sm:$0xff]  }
  0xb5   :  { %1742 = vmatpush1.bf16.msra.mxu0 %v3424_v16  ;;  %1906 = vmatpush1.bf16.msra.mxu1 %v3427_v17  ;;  %v3511_v16 = vld [vmem:[#allocation5 + $0x5a8] ss:$16 sps:$4 sm:$0xff]   ;;  %v3516_v17 = vld [vmem:[#allocation5 + $0x5c4] ss:$16 sps:$4 sm:$0xff]  }
  0xb6   :  { %1752 = vmatprep.subr.bf16.mxu0 %v3432_v18  ;;  %1916 = vmatprep.subr.bf16.mxu1 %v3435_v19  ;;  %v3519_v18 = vld [vmem:[#allocation5 + $0x5cc] ss:$16 sps:$4 sm:$0xff]   ;;  %v79_v19 = vcombine.high %v3922_v23, %v3922_v23  ;;  %v3526_v23 = vld [vmem:[#allocation5 + $0x600] ss:$16 sps:$4 sm:$0xff]  }
  0xb8   :  { %1744 = vmatmul.mubr.bf16.vlgmr.msra.gmra.mrb[0].mxu0 %v106_v21  ;;  %1908 = vmatmul.mubr.bf16.vlgmr.msra.gmra.mrb[0].mxu1 %v106_v21  ;;  %v3517_v21 = vld [vmem:[#allocation5 + $0x5c8] ss:$16 sps:$4 sm:$0xff]  }
  0xb9   :  { %1753 = vmatpush1.bf16.msra.mxu0 %v3430_v20  ;;  %1917 = vmatpush1.bf16.msra.mxu1 %v3433_v22  ;;  %v3514_v20 = vld [vmem:[#allocation5 + $0x5c0] ss:$16 sps:$4 sm:$0xff]   ;;  %v3522_v22 = vld [vmem:[#allocation5 + $0x5e4] ss:$16 sps:$4 sm:$0xff]  }
  0xba   :  { %1754 = vmatprep.subr.bf16.mxu0 %v3438_v24  ;;  %1918 = vmatprep.subr.bf16.mxu1 %v3441_v25  ;;  %v3525_v24 = vld [vmem:[#allocation5 + $0x5ec] ss:$16 sps:$4 sm:$0xff]   ;;  %v3933_v25 = vrot.slane %v79_v19, %v3912_v49  ;;  %v3532_v49 = vld [vmem:[#allocation5 + $0x620] ss:$16 sps:$4 sm:$0xff]   ;;  %v3606_v19 = vld [vmem:[#allocation5 + $0x7a4] ss:$16 sps:$4 sm:$0xff]  }
  0xbb   :  { %1784 = vmatprep.mubr.bf16.mxu0 %v109_v31  ;;  %1948 = vmatprep.mubr.bf16.mxu1 %v109_v31 }
  0xbc   :  { %v95_v31 = vcombine.high %v3933_v25, %v3933_v25 }
  0xbd   :  { %1755 = vmatpush1.bf16.msra.mxu0 %v3436_v9  ;;  %1919 = vmatpush1.bf16.msra.mxu1 %v3439_v28  ;;  %v3523_v9 = vld [vmem:[#allocation5 + $0x5e8] ss:$16 sps:$4 sm:$0xff]   ;;  %v3528_v28 = vld [vmem:[#allocation5 + $0x604] ss:$16 sps:$4 sm:$0xff]  }
  0xbe   :  { %1756 = vmatprep.subr.bf16.mxu0 %v3444_v29  ;;  %1920 = vmatprep.subr.bf16.mxu1 %v3447_v30  ;;  %v3531_v29 = vld [vmem:[#allocation5 + $0x60c] ss:$16 sps:$4 sm:$0xff]   ;;  %v3529_v30 = vld [vmem:[#allocation5 + $0x608] ss:$16 sps:$4 sm:$0xff]  }
  0xc1   :  { %1757 = vmatpush1.bf16.msra.mxu0 %v3442_v32  ;;  %1921 = vmatpush1.bf16.msra.mxu1 %v3445_v33  ;;  %v108_v32 = vpack.c.bf16 %v3926_v26, %v3926_v26  ;;  %v3534_v33 = vld [vmem:[#allocation5 + $0x624] ss:$16 sps:$4 sm:$0xff]  }
  0xc2   :  { %1758 = vmatprep.subr.bf16.mxu0 %v3450_v34  ;;  %1922 = vmatprep.subr.bf16.mxu1 %v3453_v35  ;;  %v3537_v34 = vld [vmem:[#allocation5 + $0x62c] ss:$16 sps:$4 sm:$0xff]   ;;  %v3535_v35 = vld [vmem:[#allocation5 + $0x628] ss:$16 sps:$4 sm:$0xff]   ;;  %v3546_v26 = vld [vmem:[#allocation5 + $0x664] ss:$16 sps:$4 sm:$0xff]  }
  0xc5   :  { %1759 = vmatpush1.bf16.msra.mxu0 %v3448_v36  ;;  %1923 = vmatpush1.bf16.msra.mxu1 %v3451_v37  ;;  %v111_v36 = vpack.c.bf16 %v95_v31, %v95_v31  ;;  %v3540_v37 = vld [vmem:[#allocation5 + $0x644] ss:$16 sps:$4 sm:$0xff]   ;;  %v3619_v31 = vld [vmem:[#allocation5 + $0x7e8] ss:$16 sps:$4 sm:$0xff]  }
  0xc6   :  { %1760 = vmatprep.subr.bf16.mxu0 %v3456_v38  ;;  %1924 = vmatprep.subr.bf16.mxu1 %v3459_v39  ;;  %v3543_v38 = vld [vmem:[#allocation5 + $0x64c] ss:$16 sps:$4 sm:$0xff]   ;;  %v3538_v39 = vld [vmem:[#allocation5 + $0x640] ss:$16 sps:$4 sm:$0xff]  }
  0xc9   :  { %1761 = vmatpush1.bf16.msra.mxu0 %v3454_v40  ;;  %1925 = vmatpush1.bf16.msra.mxu1 %v3457_v41  ;;  %v3541_v40 = vld [vmem:[#allocation5 + $0x648] ss:$16 sps:$4 sm:$0xff]   ;;  %v3549_v41 = vld [vmem:[#allocation5 + $0x66c] ss:$16 sps:$4 sm:$0xff]  }
  0xca   :  { %1762 = vmatprep.subr.bf16.mxu0 %v3462_v42  ;;  %1926 = vmatprep.subr.bf16.mxu1 %v3465_v44  ;;  %v3544_v42 = vld [vmem:[#allocation5 + $0x660] ss:$16 sps:$4 sm:$0xff]   ;;  %v3547_v44 = vld [vmem:[#allocation5 + $0x668] ss:$16 sps:$4 sm:$0xff]  }
  0xcd   :  { %1763 = vmatpush1.bf16.msra.mxu0 %v3460_v45  ;;  %1927 = vmatpush1.bf16.msra.mxu1 %v3463_v46  ;;  %v3552_v45 = vld [vmem:[#allocation5 + $0x684] ss:$16 sps:$4 sm:$0xff]   ;;  %v3555_v46 = vld [vmem:[#allocation5 + $0x68c] ss:$16 sps:$4 sm:$0xff]  }
  0xce   :  { %1764 = vmatprep.subr.bf16.mxu0 %v3468_v47  ;;  %1928 = vmatprep.subr.bf16.mxu1 %v3471_v48  ;;  %v3550_v47 = vld [vmem:[#allocation5 + $0x680] ss:$16 sps:$4 sm:$0xff]   ;;  %v3553_v48 = vld [vmem:[#allocation5 + $0x688] ss:$16 sps:$4 sm:$0xff]  }
  0xd1   :  { %1765 = vmatpush1.bf16.msra.mxu0 %v3466_v50  ;;  %1929 = vmatpush1.bf16.msra.mxu1 %v3469_v51  ;;  %v3558_v50 = vld [vmem:[#allocation5 + $0x6a4] ss:$16 sps:$4 sm:$0xff]   ;;  %v3561_v51 = vld [vmem:[#allocation5 + $0x6ac] ss:$16 sps:$4 sm:$0xff]  }
  0xd2   :  { %1766 = vmatprep.subr.bf16.mxu0 %v3474_v52  ;;  %1930 = vmatprep.subr.bf16.mxu1 %v3477_v53  ;;  %v3556_v52 = vld [vmem:[#allocation5 + $0x6a0] ss:$16 sps:$4 sm:$0xff]   ;;  %v3559_v53 = vld [vmem:[#allocation5 + $0x6a8] ss:$16 sps:$4 sm:$0xff]  }
  0xd5   :  { %1767 = vmatpush1.bf16.msra.mxu0 %v3472_v54  ;;  %1931 = vmatpush1.bf16.msra.mxu1 %v3475_v55  ;;  %v3564_v54 = vld [vmem:[#allocation5 + $0x6c4] ss:$16 sps:$4 sm:$0xff]   ;;  %v3567_v55 = vld [vmem:[#allocation5 + $0x6cc] ss:$16 sps:$4 sm:$0xff]  }
  0xd6   :  { %1768 = vmatprep.subr.bf16.mxu0 %v3480_v56  ;;  %1932 = vmatprep.subr.bf16.mxu1 %v3483_v57  ;;  %v3562_v56 = vld [vmem:[#allocation5 + $0x6c0] ss:$16 sps:$4 sm:$0xff]   ;;  %v3565_v57 = vld [vmem:[#allocation5 + $0x6c8] ss:$16 sps:$4 sm:$0xff]  }
  0xd9   :  { %1769 = vmatpush1.bf16.msra.mxu0 %v3478_v58  ;;  %1933 = vmatpush1.bf16.msra.mxu1 %v3481_v59  ;;  %v3570_v58 = vld [vmem:[#allocation5 + $0x6e4] ss:$16 sps:$4 sm:$0xff]   ;;  %v3573_v59 = vld [vmem:[#allocation5 + $0x6ec] ss:$16 sps:$4 sm:$0xff]  }
  0xda   :  { %1770 = vmatprep.subr.bf16.mxu0 %v3486_v60  ;;  %1934 = vmatprep.subr.bf16.mxu1 %v3489_v61  ;;  %v3568_v60 = vld [vmem:[#allocation5 + $0x6e0] ss:$16 sps:$4 sm:$0xff]   ;;  %v3571_v61 = vld [vmem:[#allocation5 + $0x6e8] ss:$16 sps:$4 sm:$0xff]  }
  0xdd   :  { %1771 = vmatpush1.bf16.msra.mxu0 %v3484_v62  ;;  %1935 = vmatpush1.bf16.msra.mxu1 %v3487_v63  ;;  %v3576_v62 = vld [vmem:[#allocation5 + $0x704] ss:$16 sps:$4 sm:$0xff]   ;;  %v3579_v63 = vld [vmem:[#allocation5 + $0x70c] ss:$16 sps:$4 sm:$0xff]  }
  0xde   :  { %1772 = vmatprep.subr.bf16.mxu0 %v3492_v0  ;;  %1936 = vmatprep.subr.bf16.mxu1 %v3495_v1  ;;  %v3574_v0 = vld [vmem:[#allocation5 + $0x700] ss:$16 sps:$4 sm:$0xff]   ;;  %v3577_v1 = vld [vmem:[#allocation5 + $0x708] ss:$16 sps:$4 sm:$0xff]  }
  0xe1   :  { %1773 = vmatpush1.bf16.msra.mxu0 %v3490_v2  ;;  %1937 = vmatpush1.bf16.msra.mxu1 %v3493_v3  ;;  %v3582_v2 = vld [vmem:[#allocation5 + $0x724] ss:$16 sps:$4 sm:$0xff]   ;;  %v3585_v3 = vld [vmem:[#allocation5 + $0x72c] ss:$16 sps:$4 sm:$0xff]  }
  0xe2   :  { %1774 = vmatprep.subr.bf16.mxu0 %v3498_v4  ;;  %1938 = vmatprep.subr.bf16.mxu1 %v3501_v5  ;;  %v3580_v4 = vld [vmem:[#allocation5 + $0x720] ss:$16 sps:$4 sm:$0xff]   ;;  %v3583_v5 = vld [vmem:[#allocation5 + $0x728] ss:$16 sps:$4 sm:$0xff]  }
  0xe5   :  { %1775 = vmatpush1.bf16.msra.mxu0 %v3496_v6  ;;  %1939 = vmatpush1.bf16.msra.mxu1 %v3499_v7  ;;  %v3588_v6 = vld [vmem:[#allocation5 + $0x744] ss:$16 sps:$4 sm:$0xff]   ;;  %v3591_v7 = vld [vmem:[#allocation5 + $0x74c] ss:$16 sps:$4 sm:$0xff]  }
  0xe6   :  { %1776 = vmatprep.subr.bf16.mxu0 %v3504_v8  ;;  %1940 = vmatprep.subr.bf16.mxu1 %v3507_v10  ;;  %v3586_v8 = vld [vmem:[#allocation5 + $0x740] ss:$16 sps:$4 sm:$0xff]   ;;  %v3589_v10 = vld [vmem:[#allocation5 + $0x748] ss:$16 sps:$4 sm:$0xff]  }
  0xe9   :  { %1777 = vmatpush1.bf16.msra.mxu0 %v3502_v11  ;;  %1941 = vmatpush1.bf16.msra.mxu1 %v3505_v12  ;;  %v3594_v11 = vld [vmem:[#allocation5 + $0x764] ss:$16 sps:$4 sm:$0xff]   ;;  %v3597_v12 = vld [vmem:[#allocation5 + $0x76c] ss:$16 sps:$4 sm:$0xff]  }
  0xea   :  { %1778 = vmatprep.subr.bf16.mxu0 %v3510_v13  ;;  %1942 = vmatprep.subr.bf16.mxu1 %v3513_v14  ;;  %v3592_v13 = vld [vmem:[#allocation5 + $0x760] ss:$16 sps:$4 sm:$0xff]   ;;  %v3595_v14 = vld [vmem:[#allocation5 + $0x768] ss:$16 sps:$4 sm:$0xff]  }
  0xed   :  { %1779 = vmatpush1.bf16.msra.mxu0 %v3508_v15  ;;  %1943 = vmatpush1.bf16.msra.mxu1 %v3511_v16  ;;  %v3600_v15 = vld [vmem:[#allocation5 + $0x784] ss:$16 sps:$4 sm:$0xff]   ;;  %v3603_v16 = vld [vmem:[#allocation5 + $0x78c] ss:$16 sps:$4 sm:$0xff]  }
  0xee   :  { %1780 = vmatprep.subr.bf16.mxu0 %v3516_v17  ;;  %1944 = vmatprep.subr.bf16.mxu1 %v3519_v18  ;;  %v3598_v17 = vld [vmem:[#allocation5 + $0x780] ss:$16 sps:$4 sm:$0xff]   ;;  %v3601_v18 = vld [vmem:[#allocation5 + $0x788] ss:$16 sps:$4 sm:$0xff]  }
  0xf1   :  { %1781 = vmatpush1.bf16.msra.mxu0 %v3514_v20  ;;  %1945 = vmatpush1.bf16.msra.mxu1 %v3517_v21  ;;  %v3609_v20 = vld [vmem:[#allocation5 + $0x7ac] ss:$16 sps:$4 sm:$0xff]   ;;  %v3604_v21 = vld [vmem:[#allocation5 + $0x7a0] ss:$16 sps:$4 sm:$0xff]  }
  0xf2   :  { %1782 = vmatprep.subr.bf16.mxu0 %v3522_v22  ;;  %1946 = vmatprep.subr.bf16.mxu1 %v3525_v24  ;;  %v3607_v22 = vld [vmem:[#allocation5 + $0x7a8] ss:$16 sps:$4 sm:$0xff]   ;;  %v3612_v24 = vld [vmem:[#allocation5 + $0x7c4] ss:$16 sps:$4 sm:$0xff]  }
  0xf5   :  { %1783 = vmatpush1.bf16.msra.mxu0 %v3520_v27  ;;  %1947 = vmatpush1.bf16.msra.mxu1 %v3523_v9  ;;  %v3615_v27 = vld [vmem:[#allocation5 + $0x7cc] ss:$16 sps:$4 sm:$0xff]   ;;  %v3610_v9 = vld [vmem:[#allocation5 + $0x7c0] ss:$16 sps:$4 sm:$0xff]  }
  0xf6   :  { %1793 = vmatprep.subr.bf16.mxu0 %v3528_v28  ;;  %1957 = vmatprep.subr.bf16.mxu1 %v3531_v29  ;;  %v3613_v28 = vld [vmem:[#allocation5 + $0x7c8] ss:$16 sps:$4 sm:$0xff]   ;;  %v3618_v29 = vld [vmem:[#allocation5 + $0x7e4] ss:$16 sps:$4 sm:$0xff]  }
  0xf8   :  { %1785 = vmatmul.mubr.bf16.vlgmr.msra.gmra.mrb[0].mxu0 %v108_v32  ;;  %1949 = vmatmul.mubr.bf16.vlgmr.msra.gmra.mrb[0].mxu1 %v108_v32  ;;  %v3625_v32 = vld [vmem:[#allocation7 + $0x4] ss:$12 sps:$4 sm:$0xff]  }
  0xf9   :  { %1794 = vmatpush1.bf16.msra.mxu0 %v3526_v23  ;;  %1958 = vmatpush1.bf16.msra.mxu1 %v3529_v30  ;;  %v3621_v23 = vld [vmem:[#allocation5 + $0x7ec] ss:$16 sps:$4 sm:$0xff]   ;;  %v3616_v30 = vld [vmem:[#allocation5 + $0x7e0] ss:$16 sps:$4 sm:$0xff]  }
  0xfa   :  { %1795 = vmatprep.subr.bf16.mxu0 %v3534_v33  ;;  %1959 = vmatprep.subr.bf16.mxu1 %v3537_v34  ;;  %v110_v33 = vpack.c.bf16 %v3933_v25, %v3933_v25  ;;  %v3623_v34 = vld [vmem:[#allocation7] ss:$12 sps:$4 sm:$0xff]  }
  0xfb   :  { %1825 = vmatprep.mubr.bf16.mxu0 %v111_v36  ;;  %1989 = vmatprep.mubr.bf16.mxu1 %v111_v36  ;;  %v3631_v36 = vld [vmem:[#allocation7 + $0x34] ss:$12 sps:$4 sm:$0xff]  }
  0xfc   :  { %v3635_v25 = vld [vmem:[#allocation7 + $0x60] ss:$12 sps:$4 sm:$0xff]  }
  0xfd   :  { %1796 = vmatpush1.bf16.msra.mxu0 %v3532_v49  ;;  %1960 = vmatpush1.bf16.msra.mxu1 %v3535_v35  ;;  %v3628_v49 = vld [vmem:[#allocation7 + $0x1c] ss:$12 sps:$4 sm:$0xff]   ;;  %v3626_v35 = vld [vmem:[#allocation7 + $0x18] ss:$12 sps:$4 sm:$0xff]  }
  0xfe   :  { %1797 = vmatprep.subr.bf16.mxu0 %v3540_v37  ;;  %1961 = vmatprep.subr.bf16.mxu1 %v3543_v38  ;;  %v3629_v37 = vld [vmem:[#allocation7 + $0x30] ss:$12 sps:$4 sm:$0xff]   ;;  %v3634_v38 = vld [vmem:[#allocation7 + $0x4c] ss:$12 sps:$4 sm:$0xff]  }
 0x101   :  { %1798 = vmatpush1.bf16.msra.mxu0 %v3538_v39  ;;  %1962 = vmatpush1.bf16.msra.mxu1 %v3541_v40  ;;  %v3632_v39 = vld [vmem:[#allocation7 + $0x48] ss:$12 sps:$4 sm:$0xff]   ;;  %v3637_v40 = vld [vmem:[#allocation7 + $0x64] ss:$12 sps:$4 sm:$0xff]  }
 0x102   :  { %1799 = vmatprep.subr.bf16.mxu0 %v3546_v26  ;;  %1963 = vmatprep.subr.bf16.mxu1 %v3549_v41  ;;  %v3640_v26 = vld [vmem:[#allocation7 + $0x7c] ss:$12 sps:$4 sm:$0xff]   ;;  %v3638_v41 = vld [vmem:[#allocation7 + $0x78] ss:$12 sps:$4 sm:$0xff]  }
 0x105   :  { %1800 = vmatpush1.bf16.msra.mxu0 %v3544_v42  ;;  %1964 = vmatpush1.bf16.msra.mxu1 %v3547_v44  ;;  %v3643_v42 = vld [vmem:[#allocation7 + $0x94] ss:$12 sps:$4 sm:$0xff]   ;;  %v3641_v44 = vld [vmem:[#allocation7 + $0x90] ss:$12 sps:$4 sm:$0xff]  }
 0x106   :  { %1801 = vmatprep.subr.bf16.mxu0 %v3552_v45  ;;  %1965 = vmatprep.subr.bf16.mxu1 %v3555_v46  ;;  %v3646_v45 = vld [vmem:[#allocation7 + $0xac] ss:$12 sps:$4 sm:$0xff]   ;;  %v3644_v46 = vld [vmem:[#allocation7 + $0xa8] ss:$12 sps:$4 sm:$0xff]  }
 0x109   :  { %1802 = vmatpush1.bf16.msra.mxu0 %v3550_v47  ;;  %1966 = vmatpush1.bf16.msra.mxu1 %v3553_v48  ;;  %v3649_v47 = vld [vmem:[#allocation7 + $0xc4] ss:$12 sps:$4 sm:$0xff]   ;;  %v3647_v48 = vld [vmem:[#allocation7 + $0xc0] ss:$12 sps:$4 sm:$0xff]  }
 0x10a   :  { %1803 = vmatprep.subr.bf16.mxu0 %v3558_v50  ;;  %1967 = vmatprep.subr.bf16.mxu1 %v3561_v51  ;;  %v3652_v50 = vld [vmem:[#allocation7 + $0xdc] ss:$12 sps:$4 sm:$0xff]   ;;  %v3650_v51 = vld [vmem:[#allocation7 + $0xd8] ss:$12 sps:$4 sm:$0xff]  }
 0x10d   :  { %1804 = vmatpush1.bf16.msra.mxu0 %v3556_v52  ;;  %1968 = vmatpush1.bf16.msra.mxu1 %v3559_v53  ;;  %v3655_v52 = vld [vmem:[#allocation7 + $0xf4] ss:$12 sps:$4 sm:$0xff]   ;;  %v3653_v53 = vld [vmem:[#allocation7 + $0xf0] ss:$12 sps:$4 sm:$0xff]  }
 0x10e   :  { %1805 = vmatprep.subr.bf16.mxu0 %v3564_v54  ;;  %1969 = vmatprep.subr.bf16.mxu1 %v3567_v55  ;;  %v3658_v54 = vld [vmem:[#allocation7 + $0x10c] ss:$12 sps:$4 sm:$0xff]   ;;  %v3656_v55 = vld [vmem:[#allocation7 + $0x108] ss:$12 sps:$4 sm:$0xff]  }
 0x111   :  { %1806 = vmatpush1.bf16.msra.mxu0 %v3562_v56  ;;  %1970 = vmatpush1.bf16.msra.mxu1 %v3565_v57  ;;  %v3661_v56 = vld [vmem:[#allocation7 + $0x124] ss:$12 sps:$4 sm:$0xff]   ;;  %v3659_v57 = vld [vmem:[#allocation7 + $0x120] ss:$12 sps:$4 sm:$0xff]  }
 0x112   :  { %1807 = vmatprep.subr.bf16.mxu0 %v3570_v58  ;;  %1971 = vmatprep.subr.bf16.mxu1 %v3573_v59  ;;  %v3664_v58 = vld [vmem:[#allocation7 + $0x13c] ss:$12 sps:$4 sm:$0xff]   ;;  %v3662_v59 = vld [vmem:[#allocation7 + $0x138] ss:$12 sps:$4 sm:$0xff]  }
 0x115   :  { %1808 = vmatpush1.bf16.msra.mxu0 %v3568_v60  ;;  %1972 = vmatpush1.bf16.msra.mxu1 %v3571_v61  ;;  %v3667_v60 = vld [vmem:[#allocation7 + $0x154] ss:$12 sps:$4 sm:$0xff]   ;;  %v3665_v61 = vld [vmem:[#allocation7 + $0x150] ss:$12 sps:$4 sm:$0xff]  }
 0x116   :  { %1809 = vmatprep.subr.bf16.mxu0 %v3576_v62  ;;  %1973 = vmatprep.subr.bf16.mxu1 %v3579_v63  ;;  %v3670_v62 = vld [vmem:[#allocation7 + $0x16c] ss:$12 sps:$4 sm:$0xff]   ;;  %v3668_v63 = vld [vmem:[#allocation7 + $0x168] ss:$12 sps:$4 sm:$0xff]  }
 0x119   :  { %1810 = vmatpush1.bf16.msra.mxu0 %v3574_v0  ;;  %1974 = vmatpush1.bf16.msra.mxu1 %v3577_v1  ;;  %v3673_v0 = vld [vmem:[#allocation7 + $0x184] ss:$12 sps:$4 sm:$0xff]   ;;  %v3719_v1 = vld [vmem:[#allocation7 + $0xc8] ss:$12 sps:$4 sm:$0xff]  }
 0x11a   :  { %1811 = vmatprep.subr.bf16.mxu0 %v3582_v2  ;;  %1975 = vmatprep.subr.bf16.mxu1 %v3585_v3  ;;  %v3720_v2 = vld [vmem:[#allocation7 + $0x8] ss:$12 sps:$4 sm:$0xff]   ;;  %v3721_v3 = vld [vmem:[#allocation7 + $0xe0] ss:$12 sps:$4 sm:$0xff]  }
 0x11d   :  { %1812 = vmatpush1.bf16.msra.mxu0 %v3580_v4  ;;  %1976 = vmatpush1.bf16.msra.mxu1 %v3583_v5  ;;  %v3722_v4 = vld [vmem:[#allocation7 + $0x20] ss:$12 sps:$4 sm:$0xff]   ;;  %v3723_v5 = vld [vmem:[#allocation7 + $0xf8] ss:$12 sps:$4 sm:$0xff]  }
 0x11e   :  { %1813 = vmatprep.subr.bf16.mxu0 %v3588_v6  ;;  %1977 = vmatprep.subr.bf16.mxu1 %v3591_v7  ;;  %v3724_v6 = vld [vmem:[#allocation7 + $0x38] ss:$12 sps:$4 sm:$0xff]   ;;  %v3725_v7 = vld [vmem:[#allocation7 + $0x110] ss:$12 sps:$4 sm:$0xff]  }
 0x121   :  { %1814 = vmatpush1.bf16.msra.mxu0 %v3586_v8  ;;  %1978 = vmatpush1.bf16.msra.mxu1 %v3589_v10  ;;  %v3726_v8 = vld [vmem:[#allocation7 + $0x50] ss:$12 sps:$4 sm:$0xff]   ;;  %v3727_v10 = vld [vmem:[#allocation7 + $0x128] ss:$12 sps:$4 sm:$0xff]  }
 0x122   :  { %1815 = vmatprep.subr.bf16.mxu0 %v3594_v11  ;;  %1979 = vmatprep.subr.bf16.mxu1 %v3597_v12  ;;  %v3728_v11 = vld [vmem:[#allocation7 + $0x68] ss:$12 sps:$4 sm:$0xff]   ;;  %v3729_v12 = vld [vmem:[#allocation7 + $0x140] ss:$12 sps:$4 sm:$0xff]  }
 0x125   :  { %1816 = vmatpush1.bf16.msra.mxu0 %v3592_v13  ;;  %1980 = vmatpush1.bf16.msra.mxu1 %v3595_v14  ;;  %v3730_v13 = vld [vmem:[#allocation7 + $0x80] ss:$12 sps:$4 sm:$0xff]   ;;  %v372_v14 = vsub.s32 0, %v3909_v43 }
 0x126   :  { %1817 = vmatprep.subr.bf16.mxu0 %v3600_v15  ;;  %1981 = vmatprep.subr.bf16.mxu1 %v3603_v16  ;;  %v3945_v15 = vld [vmem:[%s3989_s3] sm:$0xf]  ;;  %v376_v16 = vsub.s32 1, %v3909_v43 }
 0x129   :  { %1818 = vmatpush1.bf16.msra.mxu0 %v3598_v17  ;;  %1982 = vmatpush1.bf16.msra.mxu1 %v3601_v18  ;;  %v384_v17 = vsub.s32 3, %v3909_v43  ;;  %v373_v18 = vrot.slane %v3945_v15, %v372_v14 }
 0x12a   :  { %1819 = vmatprep.subr.bf16.mxu0 %v3606_v19  ;;  %1983 = vmatprep.subr.bf16.mxu1 %v3609_v20  ;;  %v377_v19 = vrot.slane %v3945_v15, %v376_v16 }
 0x12b   :  { %v385_v20 = vrot.slane %v3945_v15, %v384_v17  ;;  %v3845_v17 = vmov 0.0  }
 0x12d   :  { %1820 = vmatpush1.bf16.msra.mxu0 %v3604_v21  ;;  %1984 = vmatpush1.bf16.msra.mxu1 %v3607_v22 }
 0x12e   :  { %1821 = vmatprep.subr.bf16.mxu0 %v3612_v24  ;;  %1985 = vmatprep.subr.bf16.mxu1 %v3615_v27 }
 0x131   :  { %1822 = vmatpush1.bf16.msra.mxu0 %v3610_v9  ;;  %1986 = vmatpush1.bf16.msra.mxu1 %v3613_v28 }
 0x132   :  { %1823 = vmatprep.subr.bf16.mxu0 %v3618_v29  ;;  %1987 = vmatprep.subr.bf16.mxu1 %v3621_v23 }
 0x135   :  { %1824 = vmatpush1.bf16.msra.mxu0 %v3616_v30  ;;  %1988 = vmatpush1.bf16.msra.mxu1 %v3619_v31 }
 0x136   :  { %2402 = vmatprep.subr.bf16.mxu0 %v3625_v32  ;;  %3141 = vmatprep.subr.bf16.mxu1 %v3719_v1  ;;  %v3710_v1 = vld [vmem:[#allocation7 + $0x2b8] ss:$12 sps:$4 sm:$0xff]  }
 0x138   :  { %1826 = vmatmul.mubr.bf16.vlgmr.msra.gmra.mrb[0].mxu0 %v110_v33  ;;  %1990 = vmatmul.mubr.bf16.vlgmr.msra.gmra.mrb[0].mxu1 %v110_v33 }
 0x139   :  { %2403 = vmatpush1.bf16.msra.mxu0 %v3623_v34  ;;  %3142 = vmatpush3.bf16.msra.mxu1 %v3720_v2 }
 0x13a   :  { %2404 = vmatprep.subr.bf16.mxu0 %v3628_v49  ;;  %3143 = vmatprep.subr.bf16.mxu1 %v3721_v3  ;;  %v3715_v3 = vld [vmem:[#allocation7 + $0x2d4] ss:$12 sps:$4 sm:$0xff]  }
 0x13d   :  { %2405 = vmatpush1.bf16.msra.mxu0 %v3626_v35  ;;  %3144 = vmatpush3.bf16.msra.mxu1 %v3722_v4  ;;  %v3713_v4 = vld [vmem:[#allocation7 + $0x2d0] ss:$12 sps:$4 sm:$0xff]  }
 0x13e   :  { %2406 = vmatprep.subr.bf16.mxu0 %v3631_v36  ;;  %3145 = vmatprep.subr.bf16.mxu1 %v3723_v5  ;;  %v3671_v36 = vld [vmem:[#allocation7 + $0x180] ss:$12 sps:$4 sm:$0xff]  }
 0x141   :  { %2407 = vmatpush1.bf16.msra.mxu0 %v3629_v37  ;;  %3146 = vmatpush3.bf16.msra.mxu1 %v3724_v6  ;;  %v3718_v6 = vld [vmem:[#allocation7 + $0x2ec] ss:$12 sps:$4 sm:$0xff]  }
 0x142   :  { %2408 = vmatprep.subr.bf16.mxu0 %v3634_v38  ;;  %3147 = vmatprep.subr.bf16.mxu1 %v3725_v7  ;;  %v3676_v38 = vld [vmem:[#allocation7 + $0x19c] ss:$12 sps:$4 sm:$0xff]  }
 0x143   :  { %v3716_v7 = vld [vmem:[#allocation7 + $0x2e8] ss:$12 sps:$4 sm:$0xff]  }
 0x145   :  { %2409 = vmatpush1.bf16.msra.mxu0 %v3632_v39  ;;  %3148 = vmatpush3.bf16.msra.mxu1 %v3726_v8 }
 0x146   :  { %2410 = vmatprep.subr.bf16.mxu0 %v3637_v40  ;;  %3149 = vmatprep.subr.bf16.mxu1 %v3727_v10  ;;  %v3674_v40 = vld [vmem:[#allocation7 + $0x198] ss:$12 sps:$4 sm:$0xff]  }
 0x149   :  { %2411 = vmatpush1.bf16.msra.mxu0 %v3635_v25  ;;  %3150 = vmatpush3.bf16.msra.mxu1 %v3728_v11  ;;  %v3679_v25 = vld [vmem:[#allocation7 + $0x1b4] ss:$12 sps:$4 sm:$0xff]   ;;  %v3731_v11 = vld [vmem:[#allocation7 + $0x158] ss:$12 sps:$4 sm:$0xff]  }
 0x14a   :  { %2412 = vmatprep.subr.bf16.mxu0 %v3640_v26  ;;  %3151 = vmatprep.subr.bf16.mxu1 %v3729_v12  ;;  %v3677_v26 = vld [vmem:[#allocation7 + $0x1b0] ss:$12 sps:$4 sm:$0xff]   ;;  %v3732_v12 = vld [vmem:[#allocation7 + $0x98] ss:$12 sps:$4 sm:$0xff]  }
 0x14d   :  { %2413 = vmatpush1.bf16.msra.mxu0 %v3638_v41  ;;  %3152 = vmatpush3.bf16.msra.mxu1 %v3730_v13  ;;  %v3682_v41 = vld [vmem:[#allocation7 + $0x1cc] ss:$12 sps:$4 sm:$0xff]   ;;  %v3733_v13 = vld [vmem:[#allocation7 + $0x170] ss:$12 sps:$4 sm:$0xff]  }
 0x14e   :  { %2414 = vmatprep.subr.bf16.mxu0 %v3643_v42  ;;  %v3680_v42 = vld [vmem:[#allocation7 + $0x1c8] ss:$12 sps:$4 sm:$0xff]   ;;  %3153 = vmatprep.subr.bf16.mxu1 %v3731_v11 }
 0x151   :  { %2415 = vmatpush1.bf16.msra.mxu0 %v3641_v44  ;;  %v3685_v44 = vld [vmem:[#allocation7 + $0x1e4] ss:$12 sps:$4 sm:$0xff]   ;;  %3154 = vmatpush3.bf16.msra.mxu1 %v3732_v12 }
 0x152   :  { %2416 = vmatprep.subr.bf16.mxu0 %v3646_v45  ;;  %v3683_v45 = vld [vmem:[#allocation7 + $0x1e0] ss:$12 sps:$4 sm:$0xff]   ;;  %3155 = vmatprep.subr.bf16.mxu1 %v3733_v13 }
 0x155   :  { %2417 = vmatpush1.bf16.msra.mxu0 %v3644_v46  ;;  %v3688_v46 = vld [vmem:[#allocation7 + $0x1fc] ss:$12 sps:$4 sm:$0xff]  }
 0x156   :  { %2418 = vmatprep.subr.bf16.mxu0 %v3649_v47  ;;  %v3686_v47 = vld [vmem:[#allocation7 + $0x1f8] ss:$12 sps:$4 sm:$0xff]  }
 0x159   :  { %2419 = vmatpush1.bf16.msra.mxu0 %v3647_v48  ;;  %v3691_v48 = vld [vmem:[#allocation7 + $0x214] ss:$12 sps:$4 sm:$0xff]  }
 0x15a   :  { %2420 = vmatprep.subr.bf16.mxu0 %v3652_v50  ;;  %v3689_v50 = vld [vmem:[#allocation7 + $0x210] ss:$12 sps:$4 sm:$0xff]  }
 0x15d   :  { %2421 = vmatpush1.bf16.msra.mxu0 %v3650_v51  ;;  %v3694_v51 = vld [vmem:[#allocation7 + $0x22c] ss:$12 sps:$4 sm:$0xff]  }
 0x15e   :  { %2422 = vmatprep.subr.bf16.mxu0 %v3655_v52  ;;  %v3692_v52 = vld [vmem:[#allocation7 + $0x228] ss:$12 sps:$4 sm:$0xff]  }
 0x161   :  { %2423 = vmatpush1.bf16.msra.mxu0 %v3653_v53  ;;  %v3697_v53 = vld [vmem:[#allocation7 + $0x244] ss:$12 sps:$4 sm:$0xff]  }
 0x162   :  { %2424 = vmatprep.subr.bf16.mxu0 %v3658_v54  ;;  %v3695_v54 = vld [vmem:[#allocation7 + $0x240] ss:$12 sps:$4 sm:$0xff]  }
 0x165   :  { %2425 = vmatpush1.bf16.msra.mxu0 %v3656_v55  ;;  %v3700_v55 = vld [vmem:[#allocation7 + $0x25c] ss:$12 sps:$4 sm:$0xff]  }
 0x166   :  { %2426 = vmatprep.subr.bf16.mxu0 %v3661_v56  ;;  %v3698_v56 = vld [vmem:[#allocation7 + $0x258] ss:$12 sps:$4 sm:$0xff]  }
 0x169   :  { %2427 = vmatpush1.bf16.msra.mxu0 %v3659_v57  ;;  %v3703_v57 = vld [vmem:[#allocation7 + $0x274] ss:$12 sps:$4 sm:$0xff]  }
 0x16a   :  { %2428 = vmatprep.subr.bf16.mxu0 %v3664_v58  ;;  %v3701_v58 = vld [vmem:[#allocation7 + $0x270] ss:$12 sps:$4 sm:$0xff]  }
 0x16d   :  { %2429 = vmatpush1.bf16.msra.mxu0 %v3662_v59  ;;  %v3706_v59 = vld [vmem:[#allocation7 + $0x28c] ss:$12 sps:$4 sm:$0xff]  }
 0x16e   :  { %2430 = vmatprep.subr.bf16.mxu0 %v3667_v60  ;;  %v3704_v60 = vld [vmem:[#allocation7 + $0x288] ss:$12 sps:$4 sm:$0xff]  }
 0x171   :  { %2431 = vmatpush1.bf16.msra.mxu0 %v3665_v61  ;;  %v3709_v61 = vld [vmem:[#allocation7 + $0x2a4] ss:$12 sps:$4 sm:$0xff]  }
 0x172   :  { %2432 = vmatprep.subr.bf16.mxu0 %v3670_v62  ;;  %v3707_v62 = vld [vmem:[#allocation7 + $0x2a0] ss:$12 sps:$4 sm:$0xff]  }
 0x175   :  { %2433 = vmatpush1.bf16.msra.mxu0 %v3668_v63  ;;  %v380_v63 = vsub.s32 2, %v3909_v43  ;;  %v3738_v43 = vld [vmem:[#allocation7 + $0x1d0] ss:$12 sps:$4 sm:$0xff]  }
 0x176   :  { %2443 = vmatprep.subr.bf16.mxu0 %v3673_v0  ;;  %v3712_v0 = vld [vmem:[#allocation7 + $0x2bc] ss:$12 sps:$4 sm:$0xff]  }
 0x177   :  { %v381_v2 = vrot.slane %v3945_v15, %v380_v63  ;;  %v3734_v15 = vld [vmem:[#allocation7 + $0xb0] ss:$12 sps:$4 sm:$0xff]  }
 0x178   :  { %3156 = vmatpush3.bf16.msra.mxu1 %v3734_v15 }
 0x179   :  { %3172 = vmatprep.subr.bf16.mxu1 %v3845_v17 }
 0x20b   :  { %v1827_v21 = vpop.f32.mrb[0].mxu0  ;;  %v3956_v22 = vpop.f32.mrb[0].mxu1 }
 0x20c   :  { %v3192_v24 = vadd.f32 %v1827_v21, %v373_v18  ;;  %v1829_v27 = vpop.f32.mrb[1].mxu0  ;;  %v1993_v9 = vpop.f32.mrb[1].mxu1  ;;  %v3194_v5 = vadd.f32 %v3956_v22, %v381_v2  ;;  %v2070_v18 = vld [vmem:[%s3989_s3 + $0x4] sm:$0x3] }
 0x20d   :  { %v3193_v28 = vadd.f32 %v1829_v27, %v377_v19  ;;  %v3195_v29 = vadd.f32 %v1993_v9, %v385_v20  ;;  %v1831_v23 = vpop.f32.mrb[2].mxu0  ;;  %v1995_v30 = vpop.f32.mrb[2].mxu1  ;;  %v2075_v19 = vrot.slane %v2070_v18, %v372_v14  ;;  %v2079_v20 = vrot.slane %v2070_v18, %v376_v16  ;;  %v3737_v14 = vld [vmem:[#allocation7 + $0x1b8] ss:$12 sps:$4 sm:$0xff]   ;;  %v3739_v16 = vld [vmem:[#allocation7 + $0x1e8] ss:$12 sps:$4 sm:$0xff]  }
 0x20e   :  { %v1998_v31 = vmax.f32 %v3192_v24, 0.0  ;;  %v1832_v32 = vpop.f32.mrb[3].mxu0  ;;  %v1996_v33 = vpop.f32.mrb[3].mxu1  ;;  %v2000_v8 = vmax.f32 %v3194_v5, 0.0 }
 0x20f   :  { %v1999_v34 = vmax.f32 %v3193_v28, 0.0  ;;  %v2001_v49 = vmax.f32 %v3195_v29, 0.0  ;;  %v3736_v33 = vld [vmem:[#allocation7 + $0x1a0] ss:$12 sps:$4 sm:$0xff]  }
 0x210   :  { %v2002_v37 = vpack.c.bf16 %v1998_v31, %v1998_v31  ;;  %v2004_v10 = vpack.c.bf16 %v2000_v8, %v2000_v8  ;;  %v3735_v31 = vld [vmem:[#allocation7 + $0x188] ss:$12 sps:$4 sm:$0xff]  }
 0x211   :  { %v2003_v35 = vpack.c.bf16 %v1999_v34, %v1999_v34  ;;  %v2005_v39 = vpack.c.bf16 %v2001_v49, %v2001_v49  ;;  %v3740_v34 = vld [vmem:[#allocation7 + $0x200] ss:$12 sps:$4 sm:$0xff]   ;;  %v3741_v49 = vld [vmem:[#allocation7 + $0x218] ss:$12 sps:$4 sm:$0xff]  }
 0x213   :  { %2434 = vmatprep.mubr.bf16.mxu0 %v2003_v35  ;;  %v3742_v35 = vld [vmem:[#allocation7 + $0x230] ss:$12 sps:$4 sm:$0xff]  }
 0x214   :  { %2435 = vmatmul.mubr.bf16.vlgmr.msra.gmra.mrb[4].mxu0 %v2002_v37  ;;  %v3115_v37 = vld [vmem:[%s3989_s3 + $0x6] ss:$0 sm:$0xff] }
 0x215   :  { %2444 = vmatpush1.bf16.msra.mxu0 %v3671_v36  ;;  %2475 = vmatprep.mubr.bf16.mxu0 %v2005_v39 }
 0x216   :  { %2445 = vmatprep.subr.bf16.mxu0 %v3676_v38 }
 0x219   :  { %2446 = vmatpush1.bf16.msra.mxu0 %v3674_v40 }
 0x21a   :  { %2447 = vmatprep.subr.bf16.mxu0 %v3679_v25 }
 0x21d   :  { %2448 = vmatpush1.bf16.msra.mxu0 %v3677_v26 }
 0x21e   :  { %2449 = vmatprep.subr.bf16.mxu0 %v3682_v41 }
 0x221   :  { %2450 = vmatpush1.bf16.msra.mxu0 %v3680_v42 }
 0x222   :  { %2451 = vmatprep.subr.bf16.mxu0 %v3685_v44  ;;  %v3132_v44 = vld [vmem:[%s3989_s3 + $0x7] ss:$0 sm:$0xff] }
 0x225   :  { %2452 = vmatpush1.bf16.msra.mxu0 %v3683_v45 }
 0x226   :  { %2453 = vmatprep.subr.bf16.mxu0 %v3688_v46 }
 0x229   :  { %2454 = vmatpush1.bf16.msra.mxu0 %v3686_v47 }
 0x22a   :  { %2455 = vmatprep.subr.bf16.mxu0 %v3691_v48 }
 0x22d   :  { %2456 = vmatpush1.bf16.msra.mxu0 %v3689_v50 }
 0x22e   :  { %2457 = vmatprep.subr.bf16.mxu0 %v3694_v51 }
 0x231   :  { %2458 = vmatpush1.bf16.msra.mxu0 %v3692_v52 }
 0x232   :  { %2459 = vmatprep.subr.bf16.mxu0 %v3697_v53 }
 0x235   :  { %2460 = vmatpush1.bf16.msra.mxu0 %v3695_v54 }
 0x236   :  { %2461 = vmatprep.subr.bf16.mxu0 %v3700_v55 }
 0x239   :  { %2462 = vmatpush1.bf16.msra.mxu0 %v3698_v56 }
 0x23a   :  { %2463 = vmatprep.subr.bf16.mxu0 %v3703_v57 }
 0x23d   :  { %2464 = vmatpush1.bf16.msra.mxu0 %v3701_v58 }
 0x23e   :  { %2465 = vmatprep.subr.bf16.mxu0 %v3706_v59 }
 0x241   :  { %2466 = vmatpush1.bf16.msra.mxu0 %v3704_v60 }
 0x242   :  { %2467 = vmatprep.subr.bf16.mxu0 %v3709_v61 }
 0x245   :  { %2468 = vmatpush1.bf16.msra.mxu0 %v3707_v62 }
 0x246   :  { %2469 = vmatprep.subr.bf16.mxu0 %v3712_v0 }
 0x249   :  { %2470 = vmatpush1.bf16.msra.mxu0 %v3710_v1 }
 0x24a   :  { %2471 = vmatprep.subr.bf16.mxu0 %v3715_v3 }
 0x24d   :  { %2472 = vmatpush1.bf16.msra.mxu0 %v3713_v4 }
 0x24e   :  { %2473 = vmatprep.subr.bf16.mxu0 %v3718_v6 }
 0x251   :  { %2474 = vmatpush1.bf16.msra.mxu0 %v3716_v7 }
 0x254   :  { %2476 = vmatmul.mubr.bf16.vlgmr.msra.gmra.mrb[4].mxu0 %v2004_v10 }
 0x327   :  { %v2477_v21 = vpop.f32.mrb[4].mxu0 }
 0x328   :  { %v3196_v22 = vadd.f32 %v2477_v21, %v2075_v19  ;;  %v2479_v24 = vpop.f32.mrb[5].mxu0 }
 0x329   :  { %v3197_v27 = vadd.f32 %v2479_v24, %v2079_v20  ;;  %v2481_v9 = vpop.f32.mrb[6].mxu0 }
 0x32a   :  { %v2484_v28 = vmax.f32 %v3196_v22, 0.0  ;;  %v2482_v29 = vpop.f32.mrb[7].mxu0 }
 0x32b   :  { %v2485_v23 = vmax.f32 %v3197_v27, 0.0 }
 0x32c   :  { %v2486_v32 = vpack.c.bf16 %v2484_v28, %v2484_v28 }
 0x32d   :  { %v2487_v30 = vpack.c.bf16 %v2485_v23, %v2485_v23 }
 0x32f   :  { %2655 = vmatprep.mubr.bf16.mxu1 %v2487_v30 }
 0x330   :  { %2656 = vmatmul.mubr.bf16.vlgmr.msra.gmra.mrb[4].mxu1 %v2486_v32 }
 0x331   :  { %3173 = vmatpush3.bf16.msra.mxu1 %v3735_v31  ;;  %3188 = vmatprep.mubr.msk.bf16.mxu1 %vm3846_vm0, %v3845_v17 }
 0x332   :  { %3174 = vmatprep.subr.bf16.mxu1 %v3845_v17 }
 0x335   :  { %3175 = vmatpush3.bf16.msra.mxu1 %v3736_v33 }
 0x336   :  { %3176 = vmatprep.subr.bf16.mxu1 %v3845_v17 }
 0x339   :  { %3177 = vmatpush3.bf16.msra.mxu1 %v3737_v14 }
 0x33a   :  { %3178 = vmatprep.subr.bf16.mxu1 %v3845_v17 }
 0x33d   :  { %3179 = vmatpush3.bf16.msra.mxu1 %v3738_v43 }
 0x33e   :  { %3180 = vmatprep.subr.bf16.mxu1 %v3845_v17 }
 0x341   :  { %3181 = vmatpush3.bf16.msra.mxu1 %v3739_v16 }
 0x342   :  { %3182 = vmatprep.subr.bf16.mxu1 %v3845_v17 }
 0x345   :  { %3183 = vmatpush3.bf16.msra.mxu1 %v3740_v34 }
 0x346   :  { %3184 = vmatprep.subr.bf16.mxu1 %v3845_v17 }
 0x349   :  { %3185 = vmatpush3.bf16.msra.mxu1 %v3741_v49 }
 0x34a   :  { %3186 = vmatprep.subr.bf16.mxu1 %v3845_v17 }
 0x34d   :  { %3187 = vmatpush3.bf16.msra.mxu1 %v3742_v35 }
 0x403   :  { %v3157_v36 = vpop.f32.mrb[4].mxu1 }
 0x404   :  { %v3158_v38 = vpop.f32.mrb[5].mxu1 }
 0x405   :  { %v3159_v39 = vadd.f32 %v3158_v38, %v3157_v36  ;;  %v3160_v40 = vpop.f32.mrb[6].mxu1 }
 0x406   :  { %v3161_v25 = vpop.f32.mrb[7].mxu1 }
 0x407   :  { %v2658_v26 = vadd.f32 %v3159_v39, %v3115_v37 }
 0x409   :  { %v2663_v41 = vmax.f32 %v2658_v26, 0.0 }
 0x40b   :  { %v2664_v42 = vpack.c.bf16 %v2663_v41, %v2663_v41 }
 0x40d   :  { %3189 = vmatmul.mubr.bf16.vlgmr.msra.gmra.mrb[8].mxu1 %v2664_v42 }
 0x4e0   :  { %v2770_v45 = vpop.f32.mrb[8].mxu1 }
 0x4e1   :  { %v2771_v46 = vadd.f32 %v3132_v44, %v2770_v45  ;;  %v3190_v47 = vpop.f32.mrb[9].mxu1 }
 0x4e2   :  { %v2773_v48 = vpop.f32.mrb[10].mxu1 }
 0x4e3   :  { %v2776_v50 = vmax.f32 %v2771_v46, 0.0  ;;  %v3191_v51 = vpop.f32.mrb[11].mxu1 }
 0x4e5   :  { %v2777_v52 = vpack.c.bf16 %v2776_v50, %v2776_v50 }
 0x4e7   :  { %2778 = vst [vmem:[#allocation8] sm:$0x1] %v2777_v52 }
 0x4e8   :  { %3820 = shalt.err (!%p3817_p0)
}
 0x4e9   :  { %s3821_s13 = scalar_lea.hbm %s3990_s4, 16 }
 0x4ea   :  { %p3822_p1 = scmp.ne.s32.totalorder %s3990_s4, %s3821_s13  ;;  %p3825_p2 = scmp.lt.u32.totalorder %s3821_s13, %s3990_s4 }
 0x4ec   :  { %p3827_p3 = pnand %p3825_p2, %p3822_p1 }
 0x4ee   :  { %3830 = shalt.err (!%p3827_p3)
}
 0x4ef   :  { %2788 = dma.vmem_to_hbm [thread:$0]  %s2786_s9, 16, %s3990_s4, [#allocation4]  }
 0x4f0   :  { %3835 = dma.done.wait [#allocation4], 16  }
 0x4f1   :  { %3836 = vsyncadd [#allocation4], 4294967280 }
 0x4f2   :  { %2792 = vsyncpa [#allocation3], 1 }
 0x4f3   :  { %2793 = vsyncpa [#allocation6], 1 }
 0x4f4   :  { %2794 = vsyncpa [#allocation4], 1 }

</bundles_post_ra>
